<compile_context>
chip_gen: v7x
topology: tpu7x:2x2x1
jax: 0.10.0
libtpu: 0.0.40
codegen_flags: <defaults>
</compile_context>

<pallas_src>
import functools

import jax
import jax.numpy as jnp
from jax.experimental import pallas as pl
from jax.experimental.pallas import tpu as pltpu

BN_EPS = 1e-5
GIN_EPS = 0.0          # PyG GINConv default eps
LANE = 128
SUBLANE = 8


def _round_up(v, m):
    return (v + m - 1) // m * m


def _pad2(a, rows, cols):
    out = jnp.zeros((rows, cols), a.dtype)
    return out.at[: a.shape[0], : a.shape[1]].set(a)


# ----------------------------- fused Pallas kernel ----------------------------- #

def fused_gin_encoder_kernel(x_ref, a_ref, mask_ref, p_ref,
                             w1_ref, b1_ref, w2_ref, b2_ref,
                             gamma_ref, beta_ref,
                             xs_ref, xpool_ref,
                             *, num_layers, dpad, inv_n):
    x = x_ref[...]          # [Np, Kp]  layer-0 node features (zero padded)
    a = a_ref[...]          # [Np, Np]  A_hat = A + (1+eps)*I
    mask = mask_ref[...]    # [Np, 1]   1.0 for real nodes, 0.0 for padding rows
    p = p_ref[...]          # [Gp, Np]  one-hot pooling matrix (global_add_pool)

    for l in range(num_layers):  # static unroll: all layers fused in one kernel
        # GIN aggregation (self term folded into A_hat) -> MXU matmul
        h = jnp.dot(a, x, preferred_element_type=jnp.float32)
        # MLP: Linear -> ReLU -> Linear, then the outer F.relu
        h = jnp.dot(h, w1_ref[l], preferred_element_type=jnp.float32) + b1_ref[l]
        h = jnp.maximum(h, 0.0)
        h = jnp.dot(h, w2_ref[l], preferred_element_type=jnp.float32) + b2_ref[l]
        h = jnp.maximum(h, 0.0)

        # BatchNorm1d, training mode (biased variance), over real node rows only.
        mean = jnp.sum(h * mask, axis=0, keepdims=True) * inv_n        # [1, Kp]
        d = (h - mean) * mask
        var = jnp.sum(d * d, axis=0, keepdims=True) * inv_n            # [1, Kp]
        x = (d * jax.lax.rsqrt(var + BN_EPS) * gamma_ref[l] + beta_ref[l]) * mask

        # Lane-dense writes into the concatenated [.., L*Kp] output slabs.
        xs_ref[:, l * dpad:(l + 1) * dpad] = x
        xpool_ref[:, l * dpad:(l + 1) * dpad] = jnp.dot(
            p, x, preferred_element_type=jnp.float32)


# --------------------------------- JAX wrapper --------------------------------- #

def encoder_forward_pallas(params_raw, x, edge_index, batch, num_graphs):
    """x: [N, F] f32, edge_index: [2, E] int32, batch: [N] int32."""
    N, F = x.shape
    L = len(params_raw)
    dim = params_raw[0]["w2"].shape[1]

    Kp = max(_round_up(F, LANE), _round_up(dim, LANE))   # padded feature width
    Np = _round_up(max(N, SUBLANE), LANE)                # padded node count
    Gp = _round_up(max(num_graphs, 1), SUBLANE)          # padded graph count

    # Padded node features, adjacency with folded self loop, mask, pooling matrix.
    x_pad = _pad2(x.astype(jnp.float32), Np, Kp)
    src, dst = edge_index[0], edge_index[1]
    a_hat = (jnp.zeros((Np, Np), jnp.float32).at[dst, src].add(1.0)
             + (1.0 + GIN_EPS) * jnp.eye(Np, dtype=jnp.float32))
    mask = (jnp.arange(Np) < N).astype(jnp.float32).reshape(Np, 1)
    p_mat = jnp.zeros((Gp, Np), jnp.float32).at[batch, jnp.arange(N)].set(1.0)

    # Stacked, zero-padded per-layer parameters.
    w1s = jnp.stack([_pad2(p["w1"], Kp, Kp) for p in params_raw])
    b1s = jnp.stack([_pad2(p["b1"], 1, Kp) for p in params_raw])
    w2s = jnp.stack([_pad2(p["w2"], Kp, Kp) for p in params_raw])
    b2s = jnp.stack([_pad2(p["b2"], 1, Kp) for p in params_raw])
    gammas = jnp.stack([_pad2(p["gamma"], 1, Kp) for p in params_raw])
    betas = jnp.stack([_pad2(p["beta"], 1, Kp) for p in params_raw])

    kernel = functools.partial(
        fused_gin_encoder_kernel,
        num_layers=L, dpad=Kp, inv_n=1.0 / float(N))

    def fs(shape):
        return pl.BlockSpec(shape, lambda i, _s=shape: (0,) * len(_s))

    xs_pad, xpool_pad = pl.pallas_call(
        kernel,
        out_shape=(jax.ShapeDtypeStruct((Np, L * Kp), jnp.float32),
                   jax.ShapeDtypeStruct((Gp, L * Kp), jnp.float32)),
        grid=(1,),
        in_specs=[
            fs((Np, Kp)),        # x
            fs((Np, Np)),        # A_hat
            fs((Np, 1)),         # row mask
            fs((Gp, Np)),        # pooling matrix
            fs((L, Kp, Kp)),     # W1 stack
            fs((L, 1, Kp)),      # b1 stack
            fs((L, Kp, Kp)),     # W2 stack
            fs((L, 1, Kp)),      # b2 stack
            fs((L, 1, Kp)),      # gamma stack
            fs((L, 1, Kp)),      # beta stack
        ],
        out_specs=(fs((Np, L * Kp)), fs((Gp, L * Kp))),
        compiler_params=pltpu.CompilerParams(
            dimension_semantics=("arbitrary",)),
    )(x_pad, a_hat, mask, p_mat, w1s, b1s, w2s, b2s, gammas, betas)

    # Slice the lane-dense padded slabs back to the real concatenated outputs.
    xs_cat = jnp.concatenate(
        [xs_pad[:N, l * Kp: l * Kp + dim] for l in range(L)], axis=1)
    xpool_cat = jnp.concatenate(
        [xpool_pad[:num_graphs, l * Kp: l * Kp + dim] for l in range(L)], axis=1)
    return xpool_cat, xs_cat


# ------------------------------ pure-JAX reference ------------------------------ #

def encoder_forward_reference(params_raw, x, edge_index, batch, num_graphs):
    N = x.shape[0]
    src, dst = edge_index[0], edge_index[1]
    A = jnp.zeros((N, N), jnp.float32).at[dst, src].add(1.0)
    P = jnp.zeros((num_graphs, N), jnp.float32).at[batch, jnp.arange(N)].set(1.0)
    xs, xpool = [], []
    for p in params_raw:
        h = (1.0 + GIN_EPS) * x + A @ x
        h = jnp.maximum(h @ p["w1"] + p["b1"], 0.0)
        h = jnp.maximum(h @ p["w2"] + p["b2"], 0.0)
        mean = jnp.mean(h, axis=0, keepdims=True)
        var = jnp.mean((h - mean) ** 2, axis=0, keepdims=True)
        x = (h - mean) * jax.lax.rsqrt(var + BN_EPS) * p["gamma"] + p["beta"]
        xs.append(x)
        xpool.append(P @ x)
    return jnp.concatenate(xpool, axis=1), jnp.concatenate(xs, axis=1)


# ------------------------------------ params ------------------------------------ #

def init_encoder_params(key, num_features, dim, num_gc_layers):
    params = []
    for i in range(num_gc_layers):
        fin = num_features if i == 0 else dim
        key, k1, k2, k3, k4 = jax.random.split(key, 5)
        params.append(dict(
            w1=jax.random.normal(k1, (fin, dim), jnp.float32) * 0.1,
            b1=jax.random.normal(k2, (1, dim), jnp.float32) * 0.01,
            w2=jax.random.normal(k3, (dim, dim), jnp.float32) * 0.1,
            b2=jax.random.normal(k4, (1, dim), jnp.float32) * 0.01,
            gamma=jnp.ones((1, dim), jnp.float32),   # BatchNorm1d default init
            beta=jnp.zeros((1, dim), jnp.float32),
        ))
    return params


# ------------------------------------- main ------------------------------------- #

if __name__ == "__main__":
    num_features = 16
    dim = 32
    num_gc_layers = 3
    N = 16          # total nodes across the batch of graphs
    E = 48          # directed edges
    G = 2           # number of graphs

    key = jax.random.PRNGKey(0)
    key, kx, ks, kd = jax.random.split(key, 4)

    x = jax.random.normal(kx, (N, num_features), jnp.float32)
    src = jax.random.randint(ks, (E,), 0, N, jnp.int32)
    dst = jax.random.randint(kd, (E,), 0, N, jnp.int32)
    edge_index = jnp.stack([src, dst], axis=0)                     # [2, E]
    batch = jnp.concatenate([jnp.zeros((N // 2,), jnp.int32),
                             jnp.ones((N - N // 2,), jnp.int32)])  # [N]

    params = init_encoder_params(key, num_features, dim, num_gc_layers)

    xpool_cat, xs_cat = encoder_forward_pallas(params, x, edge_index, batch, G)
    jax.block_until_ready((xpool_cat, xs_cat))

    assert xpool_cat.shape == (G, num_gc_layers * dim)
    assert xs_cat.shape == (N, num_gc_layers * dim)

    # Correctness check against a pure-JAX reference of the PyTorch forward pass.
    xpool_ref, xs_ref = encoder_forward_reference(params, x, edge_index, batch, G)
    assert bool(jnp.allclose(xs_cat, xs_ref, rtol=2e-2, atol=2e-2))
    assert bool(jnp.allclose(xpool_cat, xpool_ref, rtol=2e-2, atol=2e-2))

    print("KERNEL_OK")
</pallas_src>

<mosaic_0001>
module attributes {stable_mosaic.version = 11 : i64} {
  func.func @fused_gin_encoder_kernel(%arg0: i32, %arg1: memref<128x128xf32, #tpu.memory_space<vmem>>, %arg2: memref<128x128xf32, #tpu.memory_space<vmem>>, %arg3: memref<128x1xf32, #tpu.memory_space<vmem>>, %arg4: memref<8x128xf32, #tpu.memory_space<vmem>>, %arg5: memref<3x128x128xf32, #tpu.memory_space<vmem>>, %arg6: memref<3x1x128xf32, #tpu.memory_space<vmem>>, %arg7: memref<3x128x128xf32, #tpu.memory_space<vmem>>, %arg8: memref<3x1x128xf32, #tpu.memory_space<vmem>>, %arg9: memref<3x1x128xf32, #tpu.memory_space<vmem>>, %arg10: memref<3x1x128xf32, #tpu.memory_space<vmem>>, %arg11: memref<128x384xf32, #tpu.memory_space<vmem>>, %arg12: memref<8x384xf32, #tpu.memory_space<vmem>>) attributes {dimension_semantics = [#tpu.dimension_semantics<arbitrary>], iteration_bounds = array<i64: 1>, scalar_prefetch = 0 : i64, scratch_operands = 0 : i64, tpu.core_type = #tpu.core_type<tc>, window_params = [{pipeline_mode = #tpu.pipeline_mode<synchronous>, transform_indices = @transform_0, window_bounds = array<i64: 128, 128>}, {pipeline_mode = #tpu.pipeline_mode<synchronous>, transform_indices = @transform_1, window_bounds = array<i64: 128, 128>}, {pipeline_mode = #tpu.pipeline_mode<synchronous>, transform_indices = @transform_2, window_bounds = array<i64: 128, 1>}, {pipeline_mode = #tpu.pipeline_mode<synchronous>, transform_indices = @transform_3, window_bounds = array<i64: 8, 128>}, {pipeline_mode = #tpu.pipeline_mode<synchronous>, transform_indices = @transform_4, window_bounds = array<i64: 3, 128, 128>}, {pipeline_mode = #tpu.pipeline_mode<synchronous>, transform_indices = @transform_5, window_bounds = array<i64: 3, 1, 128>}, {pipeline_mode = #tpu.pipeline_mode<synchronous>, transform_indices = @transform_6, window_bounds = array<i64: 3, 128, 128>}, {pipeline_mode = #tpu.pipeline_mode<synchronous>, transform_indices = @transform_7, window_bounds = array<i64: 3, 1, 128>}, {pipeline_mode = #tpu.pipeline_mode<synchronous>, transform_indices = @transform_8, window_bounds = array<i64: 3, 1, 128>}, {pipeline_mode = #tpu.pipeline_mode<synchronous>, transform_indices = @transform_9, window_bounds = array<i64: 3, 1, 128>}, {pipeline_mode = #tpu.pipeline_mode<synchronous>, transform_indices = @transform_10, window_bounds = array<i64: 128, 384>}, {pipeline_mode = #tpu.pipeline_mode<synchronous>, transform_indices = @transform_11, window_bounds = array<i64: 8, 384>}]} {
    %c0 = arith.constant 0 : index
    %c0_0 = arith.constant 0 : index
    %0 = vector.load %arg1[%c0, %c0_0] : memref<128x128xf32, #tpu.memory_space<vmem>>, vector<128x128xf32>
    %c0_1 = arith.constant 0 : index
    %c0_2 = arith.constant 0 : index
    %1 = vector.load %arg2[%c0_1, %c0_2] : memref<128x128xf32, #tpu.memory_space<vmem>>, vector<128x128xf32>
    %c0_3 = arith.constant 0 : index
    %c0_4 = arith.constant 0 : index
    %2 = vector.load %arg3[%c0_3, %c0_4] : memref<128x1xf32, #tpu.memory_space<vmem>>, vector<128x1xf32>
    %c0_5 = arith.constant 0 : index
    %c0_6 = arith.constant 0 : index
    %3 = vector.load %arg4[%c0_5, %c0_6] : memref<8x128xf32, #tpu.memory_space<vmem>>, vector<8x128xf32>
    %cst = arith.constant dense<0.000000e+00> : vector<128x128xf32>
    %4 = tpu.matmul %1, %0, %cst {dimension_numbers = #tpu.dot_dimension_numbers<[1], [0], [0], [1], [0, 0, 1, 1], [], []>} : vector<128x128xf32>, vector<128x128xf32>, vector<128x128xf32> -> vector<128x128xf32>
    %c0_7 = arith.constant 0 : index
    %c0_8 = arith.constant 0 : index
    %c0_9 = arith.constant 0 : index
    %5 = vector.load %arg5[%c0_7, %c0_8, %c0_9] : memref<3x128x128xf32, #tpu.memory_space<vmem>>, vector<1x128x128xf32>
    %6 = vector.shape_cast %5 : vector<1x128x128xf32> to vector<128x128xf32>
    %cst_10 = arith.constant dense<0.000000e+00> : vector<128x128xf32>
    %7 = tpu.matmul %4, %6, %cst_10 {dimension_numbers = #tpu.dot_dimension_numbers<[1], [0], [0], [1], [0, 0, 1, 1], [], []>} : vector<128x128xf32>, vector<128x128xf32>, vector<128x128xf32> -> vector<128x128xf32>
    %c0_11 = arith.constant 0 : index
    %c0_12 = arith.constant 0 : index
    %c0_13 = arith.constant 0 : index
    %8 = vector.load %arg6[%c0_11, %c0_12, %c0_13] : memref<3x1x128xf32, #tpu.memory_space<vmem>>, vector<1x1x128xf32>
    %9 = vector.shape_cast %8 : vector<1x1x128xf32> to vector<1x128xf32>
    %10 = vector.broadcast %9 : vector<1x128xf32> to vector<128x128xf32>
    %11 = arith.addf %7, %10 : vector<128x128xf32>
    %cst_14 = arith.constant 0.000000e+00 : f32
    %12 = vector.broadcast %cst_14 : f32 to vector<128x128xf32>
    %13 = arith.maximumf %11, %12 : vector<128x128xf32>
    %c0_15 = arith.constant 0 : index
    %c0_16 = arith.constant 0 : index
    %c0_17 = arith.constant 0 : index
    %14 = vector.load %arg7[%c0_15, %c0_16, %c0_17] : memref<3x128x128xf32, #tpu.memory_space<vmem>>, vector<1x128x128xf32>
    %15 = vector.shape_cast %14 : vector<1x128x128xf32> to vector<128x128xf32>
    %cst_18 = arith.constant dense<0.000000e+00> : vector<128x128xf32>
    %16 = tpu.matmul %13, %15, %cst_18 {dimension_numbers = #tpu.dot_dimension_numbers<[1], [0], [0], [1], [0, 0, 1, 1], [], []>} : vector<128x128xf32>, vector<128x128xf32>, vector<128x128xf32> -> vector<128x128xf32>
    %c0_19 = arith.constant 0 : index
    %c0_20 = arith.constant 0 : index
    %c0_21 = arith.constant 0 : index
    %17 = vector.load %arg8[%c0_19, %c0_20, %c0_21] : memref<3x1x128xf32, #tpu.memory_space<vmem>>, vector<1x1x128xf32>
    %18 = vector.shape_cast %17 : vector<1x1x128xf32> to vector<1x128xf32>
    %19 = vector.broadcast %18 : vector<1x128xf32> to vector<128x128xf32>
    %20 = arith.addf %16, %19 : vector<128x128xf32>
    %cst_22 = arith.constant 0.000000e+00 : f32
    %21 = vector.broadcast %cst_22 : f32 to vector<128x128xf32>
    %22 = arith.maximumf %20, %21 : vector<128x128xf32>
    %23 = vector.broadcast %2 : vector<128x1xf32> to vector<128x128xf32>
    %24 = arith.mulf %22, %23 : vector<128x128xf32>
    %cst_23 = arith.constant dense<0.000000e+00> : vector<128xf32>
    %25 = vector.multi_reduction <add>, %24, %cst_23 [0] : vector<128x128xf32> to vector<128xf32>
    %26 = vector.shape_cast %25 : vector<128xf32> to vector<1x128xf32>
    %cst_24 = arith.constant 6.250000e-02 : f32
    %27 = vector.broadcast %cst_24 : f32 to vector<1x128xf32>
    %28 = arith.mulf %26, %27 : vector<1x128xf32>
    %29 = vector.broadcast %28 : vector<1x128xf32> to vector<128x128xf32>
    %30 = arith.subf %22, %29 : vector<128x128xf32>
    %31 = vector.broadcast %2 : vector<128x1xf32> to vector<128x128xf32>
    %32 = arith.mulf %30, %31 : vector<128x128xf32>
    %33 = arith.mulf %32, %32 : vector<128x128xf32>
    %cst_25 = arith.constant dense<0.000000e+00> : vector<128xf32>
    %34 = vector.multi_reduction <add>, %33, %cst_25 [0] : vector<128x128xf32> to vector<128xf32>
    %35 = vector.shape_cast %34 : vector<128xf32> to vector<1x128xf32>
    %cst_26 = arith.constant 6.250000e-02 : f32
    %36 = vector.broadcast %cst_26 : f32 to vector<1x128xf32>
    %37 = arith.mulf %35, %36 : vector<1x128xf32>
    %cst_27 = arith.constant 9.99999974E-6 : f32
    %38 = vector.broadcast %cst_27 : f32 to vector<1x128xf32>
    %39 = arith.addf %37, %38 : vector<1x128xf32>
    %40 = math.rsqrt %39 : vector<1x128xf32>
    %41 = vector.broadcast %40 : vector<1x128xf32> to vector<128x128xf32>
    %42 = arith.mulf %32, %41 : vector<128x128xf32>
    %c0_28 = arith.constant 0 : index
    %c0_29 = arith.constant 0 : index
    %c0_30 = arith.constant 0 : index
    %43 = vector.load %arg9[%c0_28, %c0_29, %c0_30] : memref<3x1x128xf32, #tpu.memory_space<vmem>>, vector<1x1x128xf32>
    %44 = vector.shape_cast %43 : vector<1x1x128xf32> to vector<1x128xf32>
    %45 = vector.broadcast %44 : vector<1x128xf32> to vector<128x128xf32>
    %46 = arith.mulf %42, %45 : vector<128x128xf32>
    %c0_31 = arith.constant 0 : index
    %c0_32 = arith.constant 0 : index
    %c0_33 = arith.constant 0 : index
    %47 = vector.load %arg10[%c0_31, %c0_32, %c0_33] : memref<3x1x128xf32, #tpu.memory_space<vmem>>, vector<1x1x128xf32>
    %48 = vector.shape_cast %47 : vector<1x1x128xf32> to vector<1x128xf32>
    %49 = vector.broadcast %48 : vector<1x128xf32> to vector<128x128xf32>
    %50 = arith.addf %46, %49 : vector<128x128xf32>
    %51 = vector.broadcast %2 : vector<128x1xf32> to vector<128x128xf32>
    %52 = arith.mulf %50, %51 : vector<128x128xf32>
    %c0_34 = arith.constant 0 : index
    %c0_35 = arith.constant 0 : index
    %53 = vector.load %arg11[%c0_34, %c0_35] : memref<128x384xf32, #tpu.memory_space<vmem>>, vector<128x128xf32>
    tpu.vector_store %arg11[%c0_34, %c0_35], %52 {strides = array<i32>} : memref<128x384xf32, #tpu.memory_space<vmem>>, vector<128x128xf32>,
    %cst_36 = arith.constant dense<0.000000e+00> : vector<8x128xf32>
    %54 = tpu.matmul %3, %52, %cst_36 {dimension_numbers = #tpu.dot_dimension_numbers<[1], [0], [0], [1], [0, 0, 1, 1], [], []>} : vector<8x128xf32>, vector<128x128xf32>, vector<8x128xf32> -> vector<8x128xf32>
    %c0_37 = arith.constant 0 : index
    %c0_38 = arith.constant 0 : index
    %55 = vector.load %arg12[%c0_37, %c0_38] : memref<8x384xf32, #tpu.memory_space<vmem>>, vector<8x128xf32>
    tpu.vector_store %arg12[%c0_37, %c0_38], %54 {strides = array<i32>} : memref<8x384xf32, #tpu.memory_space<vmem>>, vector<8x128xf32>,
    %cst_39 = arith.constant dense<0.000000e+00> : vector<128x128xf32>
    %56 = tpu.matmul %1, %52, %cst_39 {dimension_numbers = #tpu.dot_dimension_numbers<[1], [0], [0], [1], [0, 0, 1, 1], [], []>} : vector<128x128xf32>, vector<128x128xf32>, vector<128x128xf32> -> vector<128x128xf32>
    %c1 = arith.constant 1 : index
    %c0_40 = arith.constant 0 : index
    %c0_41 = arith.constant 0 : index
    %57 = vector.load %arg5[%c1, %c0_40, %c0_41] : memref<3x128x128xf32, #tpu.memory_space<vmem>>, vector<1x128x128xf32>
    %58 = vector.shape_cast %57 : vector<1x128x128xf32> to vector<128x128xf32>
    %cst_42 = arith.constant dense<0.000000e+00> : vector<128x128xf32>
    %59 = tpu.matmul %56, %58, %cst_42 {dimension_numbers = #tpu.dot_dimension_numbers<[1], [0], [0], [1], [0, 0, 1, 1], [], []>} : vector<128x128xf32>, vector<128x128xf32>, vector<128x128xf32> -> vector<128x128xf32>
    %c1_43 = arith.constant 1 : index
    %c0_44 = arith.constant 0 : index
    %c0_45 = arith.constant 0 : index
    %60 = vector.load %arg6[%c1_43, %c0_44, %c0_45] : memref<3x1x128xf32, #tpu.memory_space<vmem>>, vector<1x1x128xf32>
    %61 = vector.shape_cast %60 : vector<1x1x128xf32> to vector<1x128xf32>
    %62 = vector.broadcast %61 : vector<1x128xf32> to vector<128x128xf32>
    %63 = arith.addf %59, %62 : vector<128x128xf32>
    %cst_46 = arith.constant 0.000000e+00 : f32
    %64 = vector.broadcast %cst_46 : f32 to vector<128x128xf32>
    %65 = arith.maximumf %63, %64 : vector<128x128xf32>
    %c1_47 = arith.constant 1 : index
    %c0_48 = arith.constant 0 : index
    %c0_49 = arith.constant 0 : index
    %66 = vector.load %arg7[%c1_47, %c0_48, %c0_49] : memref<3x128x128xf32, #tpu.memory_space<vmem>>, vector<1x128x128xf32>
    %67 = vector.shape_cast %66 : vector<1x128x128xf32> to vector<128x128xf32>
    %cst_50 = arith.constant dense<0.000000e+00> : vector<128x128xf32>
    %68 = tpu.matmul %65, %67, %cst_50 {dimension_numbers = #tpu.dot_dimension_numbers<[1], [0], [0], [1], [0, 0, 1, 1], [], []>} : vector<128x128xf32>, vector<128x128xf32>, vector<128x128xf32> -> vector<128x128xf32>
    %c1_51 = arith.constant 1 : index
    %c0_52 = arith.constant 0 : index
    %c0_53 = arith.constant 0 : index
    %69 = vector.load %arg8[%c1_51, %c0_52, %c0_53] : memref<3x1x128xf32, #tpu.memory_space<vmem>>, vector<1x1x128xf32>
    %70 = vector.shape_cast %69 : vector<1x1x128xf32> to vector<1x128xf32>
    %71 = vector.broadcast %70 : vector<1x128xf32> to vector<128x128xf32>
    %72 = arith.addf %68, %71 : vector<128x128xf32>
    %cst_54 = arith.constant 0.000000e+00 : f32
    %73 = vector.broadcast %cst_54 : f32 to vector<128x128xf32>
    %74 = arith.maximumf %72, %73 : vector<128x128xf32>
    %75 = vector.broadcast %2 : vector<128x1xf32> to vector<128x128xf32>
    %76 = arith.mulf %74, %75 : vector<128x128xf32>
    %cst_55 = arith.constant dense<0.000000e+00> : vector<128xf32>
    %77 = vector.multi_reduction <add>, %76, %cst_55 [0] : vector<128x128xf32> to vector<128xf32>
    %78 = vector.shape_cast %77 : vector<128xf32> to vector<1x128xf32>
    %cst_56 = arith.constant 6.250000e-02 : f32
    %79 = vector.broadcast %cst_56 : f32 to vector<1x128xf32>
    %80 = arith.mulf %78, %79 : vector<1x128xf32>
    %81 = vector.broadcast %80 : vector<1x128xf32> to vector<128x128xf32>
    %82 = arith.subf %74, %81 : vector<128x128xf32>
    %83 = vector.broadcast %2 : vector<128x1xf32> to vector<128x128xf32>
    %84 = arith.mulf %82, %83 : vector<128x128xf32>
    %85 = arith.mulf %84, %84 : vector<128x128xf32>
    %cst_57 = arith.constant dense<0.000000e+00> : vector<128xf32>
    %86 = vector.multi_reduction <add>, %85, %cst_57 [0] : vector<128x128xf32> to vector<128xf32>
    %87 = vector.shape_cast %86 : vector<128xf32> to vector<1x128xf32>
    %cst_58 = arith.constant 6.250000e-02 : f32
    %88 = vector.broadcast %cst_58 : f32 to vector<1x128xf32>
    %89 = arith.mulf %87, %88 : vector<1x128xf32>
    %cst_59 = arith.constant 9.99999974E-6 : f32
    %90 = vector.broadcast %cst_59 : f32 to vector<1x128xf32>
    %91 = arith.addf %89, %90 : vector<1x128xf32>
    %92 = math.rsqrt %91 : vector<1x128xf32>
    %93 = vector.broadcast %92 : vector<1x128xf32> to vector<128x128xf32>
    %94 = arith.mulf %84, %93 : vector<128x128xf32>
    %c1_60 = arith.constant 1 : index
    %c0_61 = arith.constant 0 : index
    %c0_62 = arith.constant 0 : index
    %95 = vector.load %arg9[%c1_60, %c0_61, %c0_62] : memref<3x1x128xf32, #tpu.memory_space<vmem>>, vector<1x1x128xf32>
    %96 = vector.shape_cast %95 : vector<1x1x128xf32> to vector<1x128xf32>
    %97 = vector.broadcast %96 : vector<1x128xf32> to vector<128x128xf32>
    %98 = arith.mulf %94, %97 : vector<128x128xf32>
    %c1_63 = arith.constant 1 : index
    %c0_64 = arith.constant 0 : index
    %c0_65 = arith.constant 0 : index
    %99 = vector.load %arg10[%c1_63, %c0_64, %c0_65] : memref<3x1x128xf32, #tpu.memory_space<vmem>>, vector<1x1x128xf32>
    %100 = vector.shape_cast %99 : vector<1x1x128xf32> to vector<1x128xf32>
    %101 = vector.broadcast %100 : vector<1x128xf32> to vector<128x128xf32>
    %102 = arith.addf %98, %101 : vector<128x128xf32>
    %103 = vector.broadcast %2 : vector<128x1xf32> to vector<128x128xf32>
    %104 = arith.mulf %102, %103 : vector<128x128xf32>
    %c0_66 = arith.constant 0 : index
    %c128 = arith.constant 128 : index
    %105 = vector.load %arg11[%c0_66, %c128] : memref<128x384xf32, #tpu.memory_space<vmem>>, vector<128x128xf32>
    tpu.vector_store %arg11[%c0_66, %c128], %104 {strides = array<i32>} : memref<128x384xf32, #tpu.memory_space<vmem>>, vector<128x128xf32>,
    %cst_67 = arith.constant dense<0.000000e+00> : vector<8x128xf32>
    %106 = tpu.matmul %3, %104, %cst_67 {dimension_numbers = #tpu.dot_dimension_numbers<[1], [0], [0], [1], [0, 0, 1, 1], [], []>} : vector<8x128xf32>, vector<128x128xf32>, vector<8x128xf32> -> vector<8x128xf32>
    %c0_68 = arith.constant 0 : index
    %c128_69 = arith.constant 128 : index
    %107 = vector.load %arg12[%c0_68, %c128_69] : memref<8x384xf32, #tpu.memory_space<vmem>>, vector<8x128xf32>
    tpu.vector_store %arg12[%c0_68, %c128_69], %106 {strides = array<i32>} : memref<8x384xf32, #tpu.memory_space<vmem>>, vector<8x128xf32>,
    %cst_70 = arith.constant dense<0.000000e+00> : vector<128x128xf32>
    %108 = tpu.matmul %1, %104, %cst_70 {dimension_numbers = #tpu.dot_dimension_numbers<[1], [0], [0], [1], [0, 0, 1, 1], [], []>} : vector<128x128xf32>, vector<128x128xf32>, vector<128x128xf32> -> vector<128x128xf32>
    %c2 = arith.constant 2 : index
    %c0_71 = arith.constant 0 : index
    %c0_72 = arith.constant 0 : index
    %109 = vector.load %arg5[%c2, %c0_71, %c0_72] : memref<3x128x128xf32, #tpu.memory_space<vmem>>, vector<1x128x128xf32>
    %110 = vector.shape_cast %109 : vector<1x128x128xf32> to vector<128x128xf32>
    %cst_73 = arith.constant dense<0.000000e+00> : vector<128x128xf32>
    %111 = tpu.matmul %108, %110, %cst_73 {dimension_numbers = #tpu.dot_dimension_numbers<[1], [0], [0], [1], [0, 0, 1, 1], [], []>} : vector<128x128xf32>, vector<128x128xf32>, vector<128x128xf32> -> vector<128x128xf32>
    %c2_74 = arith.constant 2 : index
    %c0_75 = arith.constant 0 : index
    %c0_76 = arith.constant 0 : index
    %112 = vector.load %arg6[%c2_74, %c0_75, %c0_76] : memref<3x1x128xf32, #tpu.memory_space<vmem>>, vector<1x1x128xf32>
    %113 = vector.shape_cast %112 : vector<1x1x128xf32> to vector<1x128xf32>
    %114 = vector.broadcast %113 : vector<1x128xf32> to vector<128x128xf32>
    %115 = arith.addf %111, %114 : vector<128x128xf32>
    %cst_77 = arith.constant 0.000000e+00 : f32
    %116 = vector.broadcast %cst_77 : f32 to vector<128x128xf32>
    %117 = arith.maximumf %115, %116 : vector<128x128xf32>
    %c2_78 = arith.constant 2 : index
    %c0_79 = arith.constant 0 : index
    %c0_80 = arith.constant 0 : index
    %118 = vector.load %arg7[%c2_78, %c0_79, %c0_80] : memref<3x128x128xf32, #tpu.memory_space<vmem>>, vector<1x128x128xf32>
    %119 = vector.shape_cast %118 : vector<1x128x128xf32> to vector<128x128xf32>
    %cst_81 = arith.constant dense<0.000000e+00> : vector<128x128xf32>
    %120 = tpu.matmul %117, %119, %cst_81 {dimension_numbers = #tpu.dot_dimension_numbers<[1], [0], [0], [1], [0, 0, 1, 1], [], []>} : vector<128x128xf32>, vector<128x128xf32>, vector<128x128xf32> -> vector<128x128xf32>
    %c2_82 = arith.constant 2 : index
    %c0_83 = arith.constant 0 : index
    %c0_84 = arith.constant 0 : index
    %121 = vector.load %arg8[%c2_82, %c0_83, %c0_84] : memref<3x1x128xf32, #tpu.memory_space<vmem>>, vector<1x1x128xf32>
    %122 = vector.shape_cast %121 : vector<1x1x128xf32> to vector<1x128xf32>
    %123 = vector.broadcast %122 : vector<1x128xf32> to vector<128x128xf32>
    %124 = arith.addf %120, %123 : vector<128x128xf32>
    %cst_85 = arith.constant 0.000000e+00 : f32
    %125 = vector.broadcast %cst_85 : f32 to vector<128x128xf32>
    %126 = arith.maximumf %124, %125 : vector<128x128xf32>
    %127 = vector.broadcast %2 : vector<128x1xf32> to vector<128x128xf32>
    %128 = arith.mulf %126, %127 : vector<128x128xf32>
    %cst_86 = arith.constant dense<0.000000e+00> : vector<128xf32>
    %129 = vector.multi_reduction <add>, %128, %cst_86 [0] : vector<128x128xf32> to vector<128xf32>
    %130 = vector.shape_cast %129 : vector<128xf32> to vector<1x128xf32>
    %cst_87 = arith.constant 6.250000e-02 : f32
    %131 = vector.broadcast %cst_87 : f32 to vector<1x128xf32>
    %132 = arith.mulf %130, %131 : vector<1x128xf32>
    %133 = vector.broadcast %132 : vector<1x128xf32> to vector<128x128xf32>
    %134 = arith.subf %126, %133 : vector<128x128xf32>
    %135 = vector.broadcast %2 : vector<128x1xf32> to vector<128x128xf32>
    %136 = arith.mulf %134, %135 : vector<128x128xf32>
    %137 = arith.mulf %136, %136 : vector<128x128xf32>
    %cst_88 = arith.constant dense<0.000000e+00> : vector<128xf32>
    %138 = vector.multi_reduction <add>, %137, %cst_88 [0] : vector<128x128xf32> to vector<128xf32>
    %139 = vector.shape_cast %138 : vector<128xf32> to vector<1x128xf32>
    %cst_89 = arith.constant 6.250000e-02 : f32
    %140 = vector.broadcast %cst_89 : f32 to vector<1x128xf32>
    %141 = arith.mulf %139, %140 : vector<1x128xf32>
    %cst_90 = arith.constant 9.99999974E-6 : f32
    %142 = vector.broadcast %cst_90 : f32 to vector<1x128xf32>
    %143 = arith.addf %141, %142 : vector<1x128xf32>
    %144 = math.rsqrt %143 : vector<1x128xf32>
    %145 = vector.broadcast %144 : vector<1x128xf32> to vector<128x128xf32>
    %146 = arith.mulf %136, %145 : vector<128x128xf32>
    %c2_91 = arith.constant 2 : index
    %c0_92 = arith.constant 0 : index
    %c0_93 = arith.constant 0 : index
    %147 = vector.load %arg9[%c2_91, %c0_92, %c0_93] : memref<3x1x128xf32, #tpu.memory_space<vmem>>, vector<1x1x128xf32>
    %148 = vector.shape_cast %147 : vector<1x1x128xf32> to vector<1x128xf32>
    %149 = vector.broadcast %148 : vector<1x128xf32> to vector<128x128xf32>
    %150 = arith.mulf %146, %149 : vector<128x128xf32>
    %c2_94 = arith.constant 2 : index
    %c0_95 = arith.constant 0 : index
    %c0_96 = arith.constant 0 : index
    %151 = vector.load %arg10[%c2_94, %c0_95, %c0_96] : memref<3x1x128xf32, #tpu.memory_space<vmem>>, vector<1x1x128xf32>
    %152 = vector.shape_cast %151 : vector<1x1x128xf32> to vector<1x128xf32>
    %153 = vector.broadcast %152 : vector<1x128xf32> to vector<128x128xf32>
    %154 = arith.addf %150, %153 : vector<128x128xf32>
    %155 = vector.broadcast %2 : vector<128x1xf32> to vector<128x128xf32>
    %156 = arith.mulf %154, %155 : vector<128x128xf32>
    %c0_97 = arith.constant 0 : index
    %c256 = arith.constant 256 : index
    %157 = vector.load %arg11[%c0_97, %c256] : memref<128x384xf32, #tpu.memory_space<vmem>>, vector<128x128xf32>
    tpu.vector_store %arg11[%c0_97, %c256], %156 {strides = array<i32>} : memref<128x384xf32, #tpu.memory_space<vmem>>, vector<128x128xf32>,
    %cst_98 = arith.constant dense<0.000000e+00> : vector<8x128xf32>
    %158 = tpu.matmul %3, %156, %cst_98 {dimension_numbers = #tpu.dot_dimension_numbers<[1], [0], [0], [1], [0, 0, 1, 1], [], []>} : vector<8x128xf32>, vector<128x128xf32>, vector<8x128xf32> -> vector<8x128xf32>
    %c0_99 = arith.constant 0 : index
    %c256_100 = arith.constant 256 : index
    %159 = vector.load %arg12[%c0_99, %c256_100] : memref<8x384xf32, #tpu.memory_space<vmem>>, vector<8x128xf32>
    tpu.vector_store %arg12[%c0_99, %c256_100], %158 {strides = array<i32>} : memref<8x384xf32, #tpu.memory_space<vmem>>, vector<8x128xf32>,
    return
  }
  func.func @transform_0(%arg0: i32) -> (i32, i32) {
    %c0_i32 = arith.constant 0 : i32
    %c0_i32_0 = arith.constant 0 : i32
    %c0_i32_1 = arith.constant 0 : i32
    return %c0_i32, %c0_i32_0 : i32, i32
  }
  func.func @transform_1(%arg0: i32) -> (i32, i32) {
    %c0_i32 = arith.constant 0 : i32
    %c0_i32_0 = arith.constant 0 : i32
    %c0_i32_1 = arith.constant 0 : i32
    return %c0_i32, %c0_i32_0 : i32, i32
  }
  func.func @transform_2(%arg0: i32) -> (i32, i32) {
    %c0_i32 = arith.constant 0 : i32
    %c0_i32_0 = arith.constant 0 : i32
    %c0_i32_1 = arith.constant 0 : i32
    return %c0_i32, %c0_i32_0 : i32, i32
  }
  func.func @transform_3(%arg0: i32) -> (i32, i32) {
    %c0_i32 = arith.constant 0 : i32
    %c0_i32_0 = arith.constant 0 : i32
    %c0_i32_1 = arith.constant 0 : i32
    return %c0_i32, %c0_i32_0 : i32, i32
  }
  func.func @transform_4(%arg0: i32) -> (i32, i32, i32) {
    %c0_i32 = arith.constant 0 : i32
    %c0_i32_0 = arith.constant 0 : i32
    %c0_i32_1 = arith.constant 0 : i32
    %c0_i32_2 = arith.constant 0 : i32
    return %c0_i32, %c0_i32_0, %c0_i32_1 : i32, i32, i32
  }
  func.func @transform_5(%arg0: i32) -> (i32, i32, i32) {
    %c0_i32 = arith.constant 0 : i32
    %c0_i32_0 = arith.constant 0 : i32
    %c0_i32_1 = arith.constant 0 : i32
    %c0_i32_2 = arith.constant 0 : i32
    return %c0_i32, %c0_i32_0, %c0_i32_1 : i32, i32, i32
  }
  func.func @transform_6(%arg0: i32) -> (i32, i32, i32) {
    %c0_i32 = arith.constant 0 : i32
    %c0_i32_0 = arith.constant 0 : i32
    %c0_i32_1 = arith.constant 0 : i32
    %c0_i32_2 = arith.constant 0 : i32
    return %c0_i32, %c0_i32_0, %c0_i32_1 : i32, i32, i32
  }
  func.func @transform_7(%arg0: i32) -> (i32, i32, i32) {
    %c0_i32 = arith.constant 0 : i32
    %c0_i32_0 = arith.constant 0 : i32
    %c0_i32_1 = arith.constant 0 : i32
    %c0_i32_2 = arith.constant 0 : i32
    return %c0_i32, %c0_i32_0, %c0_i32_1 : i32, i32, i32
  }
  func.func @transform_8(%arg0: i32) -> (i32, i32, i32) {
    %c0_i32 = arith.constant 0 : i32
    %c0_i32_0 = arith.constant 0 : i32
    %c0_i32_1 = arith.constant 0 : i32
    %c0_i32_2 = arith.constant 0 : i32
    return %c0_i32, %c0_i32_0, %c0_i32_1 : i32, i32, i32
  }
  func.func @transform_9(%arg0: i32) -> (i32, i32, i32) {
    %c0_i32 = arith.constant 0 : i32
    %c0_i32_0 = arith.constant 0 : i32
    %c0_i32_1 = arith.constant 0 : i32
    %c0_i32_2 = arith.constant 0 : i32
    return %c0_i32, %c0_i32_0, %c0_i32_1 : i32, i32, i32
  }
  func.func @transform_10(%arg0: i32) -> (i32, i32) {
    %c0_i32 = arith.constant 0 : i32
    %c0_i32_0 = arith.constant 0 : i32
    %c0_i32_1 = arith.constant 0 : i32
    return %c0_i32, %c0_i32_0 : i32, i32
  }
  func.func @transform_11(%arg0: i32) -> (i32, i32) {
    %c0_i32 = arith.constant 0 : i32
    %c0_i32_0 = arith.constant 0 : i32
    %c0_i32_1 = arith.constant 0 : i32
    return %c0_i32, %c0_i32_0 : i32, i32
  }
}

</mosaic_0001>

<bundles_post_ra>
// kernel: tpu_custom_call.1
= control target key start
LH: loop header
LB: loop body
LE: loop exit
PB: predicated region body
PF: predicated region fallthrough
CT: control target
= control target key end

     0   :  { %17 = vsyncpa [#allocation3], 0  ;;  %s5120_s0 = inlined_call_operand.vmem [shape: f32[128,128], index: 0, kind: input, shape index: {}]   ;;  %s5121_s1 = inlined_call_operand.hbm [shape: f32[128,128], index: 1, kind: input, shape index: {}]   ;;  %s5122_s2 = inlined_call_operand.vmem [shape: f32[128,1], index: 2, kind: input, shape index: {}]   ;;  %s5123_s3 = inlined_call_operand.vmem [shape: f32[8,128], index: 3, kind: input, shape index: {}]   ;;  %s5124_s4 = inlined_call_operand.hbm [shape: f32[3,128,128], index: 4, kind: input, shape index: {}]   ;;  %s5125_s5 = inlined_call_operand.vmem [shape: f32[3,1,128], index: 5, kind: input, shape index: {}]   ;;  %s5126_s6 = inlined_call_operand.hbm [shape: f32[3,128,128], index: 6, kind: input, shape index: {}]   ;;  %s5127_s7 = inlined_call_operand.vmem [shape: f32[3,1,128], index: 7, kind: input, shape index: {}]   ;;  %s5128_s8 = inlined_call_operand.vmem [shape: f32[3,1,128], index: 8, kind: input, shape index: {}]   ;;  %s5129_s9 = inlined_call_operand.vmem [shape: f32[3,1,128], index: 9, kind: input, shape index: {}]   ;;  %s5130_s10 = inlined_call_operand.hbm [shape: f32[128,384], index: 10, kind: output, shape index: {0}]   ;;  %s5131_s11 = inlined_call_operand.hbm [shape: f32[8,384], index: 11, kind: output, shape index: {1}]  }
   0x1   :  { %18 = vsyncpa [#allocation6], 0 }
   0x2   :  { %19 = vsyncpa [#allocation4], 0 }
   0x3   :  { %20 = vsyncpa [#allocation10], 0  ;;  %s4101_s17 = smov [#allocation5]   ;;  %s4102_s19 = smov [#allocation2]  }
   0x4   :  { %s44_s18 = sshll.u32 %s4101_s17, 4  ;;  %s28_s20 = sshll.u32 %s4102_s19, 4  ;;  %s45_s18 = int_to_ptr.vmem [resolvable:$true] %s44_s18  ;;  %s4174_s20 = int_to_ptr.vmem [resolvable:$true] %s28_s20 }
   0x5   :  { %s3983_s23 = scalar_lea.hbm %s5124_s4, 6144 }
   0x6   :  { %p3984_p0 = scmp.ne.s32.totalorder %s5124_s4, %s3983_s23  ;;  %p3987_p1 = scmp.lt.u32.totalorder %s3983_s23, %s5124_s4 }
   0x8   :  { %p3989_p2 = pnand %p3987_p1, %p3984_p0 }
   0xa   :  { %3992 = shalt.err (!%p3989_p2)
}
   0xb   :  { %s3993_s28 = scalar_lea.vmem %s45_s18, 6144  ;;  %p3998_p4 = scmp.lt.s32.totalorder %s45_s18, %s45_s18 }
   0xc   :  { %p3994_p3 = scmp.ne.s32.totalorder %s45_s18, %s3993_s28  ;;  %p3999_p5 = scmp.lt.s32.totalorder %s3993_s28, %s3993_s28 }
   0xe   :  { %p4000_p6 = por %p3999_p5, %p3998_p4 }
  0x10   :  { %p4001_p7 = pnand %p4000_p6, %p3994_p3 }
  0x12   :  { %4004 = shalt.err (!%p4001_p7)
}
  0x13   :  { %s4103_s29 = smov 128   ;;  %s4104_s30 = smov 8  }
  0x14   :  { %50 = dma.hbm_to_vmem [thread:$0]  %s5124_s4, 6144, %s45_s18, [#allocation6], %s4103_s29, %s4103_s29, %s4104_s30  }
  0x15   :  { %s4005_s16 = scalar_lea.hbm %s5121_s1, 2048 }
  0x16   :  { %p4006_p8 = scmp.ne.s32.totalorder %s5121_s1, %s4005_s16  ;;  %p4009_p9 = scmp.lt.u32.totalorder %s4005_s16, %s5121_s1 }
  0x18   :  { %p4011_p10 = pnand %p4009_p9, %p4006_p8 }
  0x1a   :  { %4014 = shalt.err (!%p4011_p10)
}
  0x1b   :  { %s4015_s23 = scalar_lea.vmem %s4174_s20, 2048  ;;  %p4020_p12 = scmp.lt.s32.totalorder %s4174_s20, %s4174_s20 }
  0x1c   :  { %p4016_p11 = scmp.ne.s32.totalorder %s4174_s20, %s4015_s23  ;;  %p4021_p13 = scmp.lt.s32.totalorder %s4015_s23, %s4015_s23 }
  0x1e   :  { %p4022_p0 = por %p4021_p13, %p4020_p12 }
  0x20   :  { %p4023_p1 = pnand %p4022_p0, %p4016_p11 }
  0x22   :  { %4026 = shalt.err (!%p4023_p1)
}
  0x23   :  { %34 = dma.hbm_to_vmem [thread:$0]  %s5121_s1, 2048, %s4174_s20, [#allocation3], %s4103_s29, %s4103_s29, %s4104_s30  }
  0x24   :  { %s4105_s24 = smov [#allocation7]   ;;  %s4027_s28 = scalar_lea.hbm %s5126_s6, 6144 }
  0x25   :  { %s58_s25 = sshll.u32 %s4105_s24, 4  ;;  %p4028_p2 = scmp.ne.s32.totalorder %s5126_s6, %s4027_s28  ;;  %s59_s25 = int_to_ptr.vmem [resolvable:$true] %s58_s25 }
  0x26   :  { %p4031_p3 = scmp.lt.u32.totalorder %s4027_s28, %s5126_s6 }
  0x28   :  { %p4033_p4 = pnand %p4031_p3, %p4028_p2 }
  0x2a   :  { %4036 = shalt.err (!%p4033_p4)
}
  0x2b   :  { %s4037_s16 = scalar_lea.vmem %s59_s25, 6144  ;;  %p4042_p6 = scmp.lt.s32.totalorder %s59_s25, %s59_s25 }
  0x2c   :  { %p4038_p5 = scmp.ne.s32.totalorder %s59_s25, %s4037_s16  ;;  %p4043_p7 = scmp.lt.s32.totalorder %s4037_s16, %s4037_s16 }
  0x2e   :  { %p4044_p8 = por %p4043_p7, %p4042_p6 }
  0x30   :  { %p4045_p9 = pnand %p4044_p8, %p4038_p5 }
  0x32   :  { %4048 = shalt.err (!%p4045_p9)
}
  0x33   :  { %64 = dma.hbm_to_vmem [thread:$0]  %s5126_s6, 6144, %s59_s25, [#allocation6], %s4103_s29, %s4103_s29, %s4104_s30  }
  0x34   :  { %4093 = dma.done.wait [#allocation3], 2048  }
  0x35   :  { %4094 = vsyncadd [#allocation3], 4294965248 }
  0x36   :  { %4095 = dma.done.wait [#allocation6], 12288  }
  0x37   :  { %4096 = vsyncadd [#allocation6], 4294955008  ;;  %v80_v0 = vld [vmem:[%s5120_s0] sm:$0xff]  ;;  %v81_v1 = vld [vmem:[%s5120_s0 + $0x8] sm:$0xff]  ;;  %vm4108_vm0 = vmmov 0   ;;  %s4110_s15 = smov [#allocation8]  }
  0x38   :  { %v82_v2 = vld [vmem:[%s5120_s0 + $0x10] sm:$0xff]  ;;  %v3585_v3 = vpack.c.bf16 %v81_v1, %v80_v0  ;;  %v83_v4 = vld [vmem:[%s5120_s0 + $0x18] sm:$0xff]  ;;  %v84_v6 = vld [vmem:[%s5120_s0 + $0x20] sm:$0xff]  ;;  %s2590_s16 = sshll.u32 %s4110_s15, 4  ;;  %s2591_s16 = int_to_ptr.vmem [resolvable:$true] %s2590_s16 }
  0x39   :  { %v3589_v5 = vpack.c.bf16 %v83_v4, %v82_v2  ;;  %v85_v7 = vld [vmem:[%s5120_s0 + $0x28] sm:$0xff]  ;;  %v4244_v9 = vld [vmem:[#allocation2] sm:$0xff]  ;;  %v86_v10 = vld [vmem:[%s5120_s0 + $0x30] sm:$0xff]  ;;  %p4054_p11 = scmp.lt.s32.totalorder %s2591_s16, %s2591_s16 }
  0x3a   :  { %3586 = vmatprep.subr.bf16.mxu0 %v3585_v3  ;;  %v3593_v8 = vpack.c.bf16 %v85_v7, %v84_v6  ;;  %v87_v11 = vld [vmem:[%s5120_s0 + $0x38] sm:$0xff]  ;;  %3008 = vmatprep.mubr.f32.mxu0 %v4244_v9  ;;  %v88_v13 = vld [vmem:[%s5120_s0 + $0x40] sm:$0xff]  ;;  %v89_v14 = vld [vmem:[%s5120_s0 + $0x48] sm:$0xff] }
  0x3b   :  { %3588 = vmatpush3.bf16.msra.mxu0 %v3585_v3  ;;  %v3597_v12 = vpack.c.bf16 %v87_v11, %v86_v10  ;;  %v274_v15 = vld [vmem:[#allocation5] sm:$0xff]  ;;  %v275_v16 = vld [vmem:[#allocation5 + $0x8] sm:$0xff]  ;;  %v276_v17 = vld [vmem:[#allocation5 + $0x10] sm:$0xff]  ;;  %v3601_v21 = vpack.c.bf16 %v89_v14, %v88_v13 }
  0x3c   :  { %3590 = vmatprep.subr.bf16.mxu0 %v3589_v5  ;;  %v277_v18 = vld [vmem:[#allocation5 + $0x18] sm:$0xff]  ;;  %v3617_v19 = vpack.c.bf16 %v275_v16, %v274_v15  ;;  %v278_v22 = vld [vmem:[#allocation5 + $0x20] sm:$0xff]  ;;  %v279_v23 = vld [vmem:[#allocation5 + $0x28] sm:$0xff] }
  0x3d   :  { %v3621_v20 = vpack.c.bf16 %v277_v18, %v276_v17  ;;  %v90_v24 = vld [vmem:[%s5120_s0 + $0x50] sm:$0xff]  ;;  %v91_v25 = vld [vmem:[%s5120_s0 + $0x58] sm:$0xff]  ;;  %v3625_v26 = vpack.c.bf16 %v279_v23, %v278_v22  ;;  %v92_v30 = vld [vmem:[%s5120_s0 + $0x60] sm:$0xff] }
  0x3e   :  { %3618 = vmatprep.subr.bf16.mxu1 %v3617_v19  ;;  %v3605_v27 = vpack.c.bf16 %v91_v25, %v90_v24  ;;  %v280_v28 = vld [vmem:[#allocation5 + $0x30] sm:$0xff]  ;;  %v281_v29 = vld [vmem:[#allocation5 + $0x38] sm:$0xff]  ;;  %v93_v31 = vld [vmem:[%s5120_s0 + $0x68] sm:$0xff] }
  0x3f   :  { %3592 = vmatpush3.bf16.msra.mxu0 %v3589_v5  ;;  %3620 = vmatpush3.bf16.msra.mxu1 %v3617_v19  ;;  %v3629_v32 = vpack.c.bf16 %v281_v29, %v280_v28  ;;  %v3609_v33 = vpack.c.bf16 %v93_v31, %v92_v30  ;;  %v282_v34 = vld [vmem:[#allocation5 + $0x40] sm:$0xff]  ;;  %v283_v35 = vld [vmem:[#allocation5 + $0x48] sm:$0xff]  ;;  %v94_v36 = vld [vmem:[%s5120_s0 + $0x70] sm:$0xff] }
  0x40   :  { %3594 = vmatprep.subr.bf16.mxu0 %v3593_v8  ;;  %3622 = vmatprep.subr.bf16.mxu1 %v3621_v20  ;;  %v95_v37 = vld [vmem:[%s5120_s0 + $0x78] sm:$0xff]  ;;  %v3633_v38 = vpack.c.bf16 %v283_v35, %v282_v34  ;;  %v284_v40 = vld [vmem:[#allocation5 + $0x50] sm:$0xff]  ;;  %v286_v43 = vld [vmem:[#allocation5 + $0x60] sm:$0xff] }
  0x41   :  { %v3613_v39 = vpack.c.bf16 %v95_v37, %v94_v36  ;;  %v285_v41 = vld [vmem:[#allocation5 + $0x58] sm:$0xff]  ;;  %v287_v44 = vld [vmem:[#allocation5 + $0x68] sm:$0xff]  ;;  %v98_v47 = vld [vmem:[#allocation2 + $0x10] sm:$0xff] }
  0x42   :  { %v3637_v42 = vpack.c.bf16 %v285_v41, %v284_v40  ;;  %v97_v45 = vld [vmem:[#allocation2 + $0x8] sm:$0xff]  ;;  %v3641_v46 = vpack.c.bf16 %v287_v44, %v286_v43  ;;  %v288_v48 = vld [vmem:[#allocation5 + $0x70] sm:$0xff]  ;;  %v289_v49 = vld [vmem:[#allocation5 + $0x78] sm:$0xff]  ;;  %v4106_v43 = vmov 0  }
  0x43   :  { %3596 = vmatpush3.bf16.msra.mxu0 %v3593_v8  ;;  %3624 = vmatpush3.bf16.msra.mxu1 %v3621_v20  ;;  %v99_v50 = vld [vmem:[#allocation2 + $0x18] sm:$0xff]  ;;  %v3645_v51 = vpack.c.bf16 %v289_v49, %v288_v48  ;;  %v100_v52 = vld [vmem:[#allocation2 + $0x20] sm:$0xff]  ;;  %v101_v53 = vld [vmem:[#allocation2 + $0x28] sm:$0xff] }
  0x44   :  { %3598 = vmatprep.subr.bf16.mxu0 %v3597_v12  ;;  %3626 = vmatprep.subr.bf16.mxu1 %v3625_v26  ;;  %v102_v54 = vld [vmem:[#allocation2 + $0x30] sm:$0xff]  ;;  %v103_v55 = vld [vmem:[#allocation2 + $0x38] sm:$0xff]  ;;  %v104_v56 = vld [vmem:[#allocation2 + $0x40] sm:$0xff] }
  0x45   :  { %v105_v57 = vld [vmem:[#allocation2 + $0x48] sm:$0xff]  ;;  %v106_v58 = vld [vmem:[#allocation2 + $0x50] sm:$0xff]  ;;  %v107_v59 = vld [vmem:[#allocation2 + $0x58] sm:$0xff]  ;;  %3958 = vset.pattern.permute.xlu0 %v4106_v43  ;;  %3959 = vset.pattern.permute.xlu1 %v4106_v43 }
  0x46   :  { %v108_v60 = vld [vmem:[#allocation2 + $0x60] sm:$0xff]  ;;  %v109_v61 = vld [vmem:[#allocation2 + $0x68] sm:$0xff]  ;;  %v110_v62 = vld [vmem:[#allocation2 + $0x70] sm:$0xff] }
  0x47   :  { %3600 = vmatpush3.bf16.msra.mxu0 %v3597_v12  ;;  %3628 = vmatpush3.bf16.msra.mxu1 %v3625_v26  ;;  %v111_v63 = vld [vmem:[#allocation2 + $0x78] sm:$0xff]  ;;  %v458_v0 = vld [vmem:[#allocation7] sm:$0xff]  ;;  %v459_v1 = vld [vmem:[#allocation7 + $0x8] sm:$0xff] }
  0x48   :  { %3602 = vmatprep.subr.bf16.mxu0 %v3601_v21  ;;  %3630 = vmatprep.subr.bf16.mxu1 %v3629_v32  ;;  %v460_v2 = vld [vmem:[#allocation7 + $0x10] sm:$0xff]  ;;  %v3649_v3 = vpack.c.bf16 %v459_v1, %v458_v0  ;;  %v461_v4 = vld [vmem:[#allocation7 + $0x18] sm:$0xff]  ;;  %v462_v6 = vld [vmem:[#allocation7 + $0x20] sm:$0xff] }
  0x49   :  { %v3653_v5 = vpack.c.bf16 %v461_v4, %v460_v2  ;;  %v463_v7 = vld [vmem:[#allocation7 + $0x28] sm:$0xff]  ;;  %v464_v10 = vld [vmem:[#allocation7 + $0x30] sm:$0xff]  ;;  %v465_v11 = vld [vmem:[#allocation7 + $0x38] sm:$0xff] }
  0x4a   :  { %v3657_v8 = vpack.c.bf16 %v463_v7, %v462_v6  ;;  %v3661_v12 = vpack.c.bf16 %v465_v11, %v464_v10  ;;  %v466_v13 = vld [vmem:[#allocation7 + $0x40] sm:$0xff]  ;;  %v467_v14 = vld [vmem:[#allocation7 + $0x48] sm:$0xff]  ;;  %v468_v16 = vld [vmem:[#allocation7 + $0x50] sm:$0xff] }
  0x4b   :  { %3604 = vmatpush3.bf16.msra.mxu0 %v3601_v21  ;;  %3632 = vmatpush3.bf16.msra.mxu1 %v3629_v32  ;;  %v3665_v15 = vpack.c.bf16 %v467_v14, %v466_v13  ;;  %v469_v17 = vld [vmem:[#allocation7 + $0x58] sm:$0xff]  ;;  %v470_v19 = vld [vmem:[#allocation7 + $0x60] sm:$0xff]  ;;  %v471_v20 = vld [vmem:[#allocation7 + $0x68] sm:$0xff] }
  0x4c   :  { %3606 = vmatprep.subr.bf16.mxu0 %v3605_v27  ;;  %3634 = vmatprep.subr.bf16.mxu1 %v3633_v38  ;;  %v3669_v18 = vpack.c.bf16 %v469_v17, %v468_v16  ;;  %v3673_v21 = vpack.c.bf16 %v471_v20, %v470_v19  ;;  %v112_v41 = vld [vmem:[%s5122_s2] sm:$0xff]  ;;  %v113_v44 = vld [vmem:[%s5122_s2 + $0x8] sm:$0xff]  ;;  %v118_v48 = vld [vmem:[%s5122_s2 + $0x30] sm:$0xff] }
  0x4d   :  { %644 = vperm.xlu0 %3958, %v112_v41   ;;  %v119_v49 = vld [vmem:[%s5122_s2 + $0x38] sm:$0xff] }
  0x4f   :  { %3608 = vmatpush3.bf16.msra.mxu0 %v3605_v27  ;;  %3636 = vmatpush3.bf16.msra.mxu1 %v3633_v38  ;;  %v472_v38 = vld [vmem:[#allocation7 + $0x70] sm:$0xff] }
  0x50   :  { %3610 = vmatprep.subr.bf16.mxu0 %v3609_v33  ;;  %3638 = vmatprep.subr.bf16.mxu1 %v3637_v42 }
  0x51   :  { %649 = vperm.xlu0 %3958, %v113_v44  }
  0x53   :  { %3612 = vmatpush3.bf16.msra.mxu0 %v3609_v33  ;;  %3640 = vmatpush3.bf16.msra.mxu1 %v3637_v42  ;;  %v114_v42 = vld [vmem:[%s5122_s2 + $0x10] sm:$0xff] }
  0x54   :  { %3614 = vmatprep.subr.bf16.mxu0 %v3613_v39  ;;  %3642 = vmatprep.subr.bf16.mxu1 %v3641_v46 }
  0x55   :  { %654 = vperm.xlu1 %3959, %v114_v42  }
  0x57   :  { %3616 = vmatpush3.bf16.msra.mxu0 %v3613_v39  ;;  %3644 = vmatpush3.bf16.msra.mxu1 %v3641_v46  ;;  %v473_v39 = vld [vmem:[#allocation7 + $0x78] sm:$0xff]  ;;  %v116_v46 = vld [vmem:[%s5122_s2 + $0x20] sm:$0xff] }
  0x58   :  { %3646 = vmatprep.subr.bf16.mxu1 %v3645_v51  ;;  %3650 = vmatprep.subr.bf16.mxu0 %v3649_v3  ;;  %v3677_v40 = vpack.c.bf16 %v473_v39, %v472_v38 }
  0x59   :  { %664 = vperm.xlu0 %3958, %v116_v46  }
  0x5a   :  { %3009 = vmatmul.mubr.f32.vlgmr.msra.gmra.mrb[0].mxu0 %v97_v45  ;;  %v115_v45 = vld [vmem:[%s5122_s2 + $0x18] sm:$0xff] }
  0x5b   :  { %3011 = vmatprep.mubr.f32.mxu0 %v98_v47  ;;  %3648 = vmatpush3.bf16.msra.mxu1 %v3645_v51  ;;  %v117_v47 = vld [vmem:[%s5122_s2 + $0x28] sm:$0xff] }
  0x5c   :  { %3652 = vmatpush3.bf16.msra.mxu0 %v3649_v3  ;;  %659 = vperm.xlu1 %3959, %v115_v45   ;;  %v121_v51 = vld [vmem:[%s5122_s2 + $0x48] sm:$0xff] }
  0x5d   :  { %3654 = vmatprep.subr.bf16.mxu0 %v3653_v5  ;;  %674 = vperm.xlu0 %3958, %v118_v48   ;;  %v5133_v48 = vmov 0.0|0.0  }
  0x5e   :  { %3012 = vmatmul.mubr.f32.gmra.mrb[2].mxu0 %v99_v50  ;;  %v120_v50 = vld [vmem:[%s5122_s2 + $0x40] sm:$0xff]  ;;  %3681 = vmatprep.subr.bf16.mxu1 %v5133_v48 }
  0x5f   :  { %3014 = vmatprep.mubr.f32.mxu0 %v100_v52  ;;  %v122_v52 = vld [vmem:[%s5122_s2 + $0x50] sm:$0xff] }
  0x60   :  { %3656 = vmatpush3.bf16.msra.mxu0 %v3653_v5  ;;  %669 = vperm.xlu1 %3959, %v117_v47   ;;  %v4338_v47 = vld [vmem:[%s5127_s7] ss:$0 sm:$0xff] }
  0x61   :  { %3658 = vmatprep.subr.bf16.mxu0 %v3657_v8  ;;  %684 = vperm.xlu0 %3958, %v120_v50  }
  0x62   :  { %3015 = vmatmul.mubr.f32.gmra.mrb[4].mxu0 %v101_v53  ;;  %v123_v53 = vld [vmem:[%s5122_s2 + $0x58] sm:$0xff] }
  0x63   :  { %3017 = vmatprep.mubr.f32.mxu0 %v102_v54  ;;  %v124_v54 = vld [vmem:[%s5122_s2 + $0x60] sm:$0xff] }
  0x64   :  { %3660 = vmatpush3.bf16.msra.mxu0 %v3657_v8  ;;  %679 = vperm.xlu1 %3959, %v119_v49  }
  0x65   :  { %3662 = vmatprep.subr.bf16.mxu0 %v3661_v12  ;;  %694 = vperm.xlu0 %3958, %v122_v52  }
  0x66   :  { %3018 = vmatmul.mubr.f32.gmra.mrb[6].mxu0 %v103_v55  ;;  %v125_v55 = vld [vmem:[%s5122_s2 + $0x68] sm:$0xff] }
  0x67   :  { %3020 = vmatprep.mubr.f32.mxu0 %v104_v56  ;;  %v126_v56 = vld [vmem:[%s5122_s2 + $0x70] sm:$0xff] }
  0x68   :  { %3664 = vmatpush3.bf16.msra.mxu0 %v3661_v12  ;;  %689 = vperm.xlu1 %3959, %v121_v51  }
  0x69   :  { %3666 = vmatprep.subr.bf16.mxu0 %v3665_v15  ;;  %704 = vperm.xlu0 %3958, %v124_v54  }
  0x6a   :  { %3021 = vmatmul.mubr.f32.gmra.mrb[8].mxu0 %v105_v57  ;;  %v127_v57 = vld [vmem:[%s5122_s2 + $0x78] sm:$0xff]  ;;  %s4049_s2 = scalar_lea.vmem %s2591_s16, 6144 }
  0x6b   :  { %3023 = vmatprep.mubr.f32.mxu0 %v106_v58  ;;  %v2617_v58 = vld [vmem:[%s5125_s5] ss:$0 sm:$0xff]  ;;  %p4050_p10 = scmp.ne.s32.totalorder %s2591_s16, %s4049_s2  ;;  %p4055_p12 = scmp.lt.s32.totalorder %s4049_s2, %s4049_s2 }
  0x6c   :  { %3668 = vmatpush3.bf16.msra.mxu0 %v3665_v15  ;;  %699 = vperm.xlu1 %3959, %v123_v53  }
  0x6d   :  { %3670 = vmatprep.subr.bf16.mxu0 %v3669_v18  ;;  %714 = vperm.xlu0 %3958, %v126_v56   ;;  %p4056_p13 = por %p4055_p12, %p4054_p11 }
  0x6e   :  { %3024 = vmatmul.mubr.f32.gmra.mrb[10].mxu0 %v107_v59 }
  0x6f   :  { %3026 = vmatprep.mubr.f32.mxu0 %v108_v60  ;;  %p4057_p0 = pnand %p4056_p13, %p4050_p10 }
  0x70   :  { %3672 = vmatpush3.bf16.msra.mxu0 %v3669_v18  ;;  %709 = vperm.xlu1 %3959, %v125_v55  }
  0x71   :  { %3674 = vmatprep.subr.bf16.mxu0 %v3673_v21 }
  0x72   :  { %3027 = vmatmul.mubr.f32.gmra.mrb[12].mxu0 %v109_v61 }
  0x73   :  { %3029 = vmatprep.mubr.f32.mxu0 %v110_v62 }
  0x74   :  { %3676 = vmatpush3.bf16.msra.mxu0 %v3673_v21  ;;  %719 = vperm.xlu1 %3959, %v127_v57  }
  0x75   :  { %3678 = vmatprep.subr.bf16.mxu0 %v3677_v40 }
  0x76   :  { %3030 = vmatmul.mubr.f32.gmra.mrb[14].mxu0 %v111_v63 }
  0x78   :  { %3680 = vmatpush3.bf16.msra.mxu0 %v3677_v40 }
  0xcc   :  { %v4329_v44 = vpop.permute.xlu0 %644 }
  0xd0   :  { %v4333_v46 = vpop.permute.xlu0 %649 }
  0xd4   :  { %v4331_v45 = vpop.permute.xlu1 %654 }
  0xd8   :  { %v4349_v53 = vpop.permute.xlu0 %664 }
  0xdb   :  { %v4341_v49 = vpop.permute.xlu1 %659 }
  0xdf   :  { %v4353_v57 = vpop.permute.xlu1 %669 }
 0x12d   :  { %v3010_v22 = vpop.f32.mrb[0].mxu0 }
 0x12e   :  { %v195_v23 = vpop.f32.mrb[1].mxu0 }
 0x12f   :  { %3064 = vmatprep.mubr.f32.mxu1 %v195_v23 }
 0x130   :  { %3065 = vmatmul.mubr.f32.vlgmr.msra.gmra.mrb[0].mxu1 %v3010_v22 }
 0x131   :  { %v3013_v24 = vpop.f32.mrb[2].mxu0 }
 0x132   :  { %v205_v25 = vpop.f32.mrb[3].mxu0 }
 0x133   :  { %3067 = vmatprep.mubr.f32.mxu1 %v205_v25 }
 0x134   :  { %3068 = vmatmul.mubr.f32.gmra.mrb[2].mxu1 %v3013_v24 }
 0x135   :  { %v3016_v26 = vpop.f32.mrb[4].mxu0 }
 0x136   :  { %v215_v27 = vpop.f32.mrb[5].mxu0 }
 0x137   :  { %3070 = vmatprep.mubr.f32.mxu1 %v215_v27 }
 0x138   :  { %3071 = vmatmul.mubr.f32.gmra.mrb[4].mxu1 %v3016_v26 }
 0x139   :  { %v3019_v28 = vpop.f32.mrb[6].mxu0 }
 0x13a   :  { %v225_v29 = vpop.f32.mrb[7].mxu0 }
 0x13b   :  { %3073 = vmatprep.mubr.f32.mxu1 %v225_v29 }
 0x13c   :  { %3074 = vmatmul.mubr.f32.gmra.mrb[6].mxu1 %v3019_v28 }
 0x13d   :  { %v3022_v30 = vpop.f32.mrb[8].mxu0 }
 0x13e   :  { %v235_v31 = vpop.f32.mrb[9].mxu0 }
 0x13f   :  { %3076 = vmatprep.mubr.f32.mxu1 %v235_v31 }
 0x140   :  { %3077 = vmatmul.mubr.f32.gmra.mrb[8].mxu1 %v3022_v30 }
 0x141   :  { %v3025_v32 = vpop.f32.mrb[10].mxu0 }
 0x142   :  { %v245_v33 = vpop.f32.mrb[11].mxu0 }
 0x143   :  { %3079 = vmatprep.mubr.f32.mxu1 %v245_v33 }
 0x144   :  { %3080 = vmatmul.mubr.f32.gmra.mrb[10].mxu1 %v3025_v32 }
 0x145   :  { %v3028_v34 = vpop.f32.mrb[12].mxu0 }
 0x146   :  { %v255_v35 = vpop.f32.mrb[13].mxu0 }
 0x147   :  { %3082 = vmatprep.mubr.f32.mxu1 %v255_v35 }
 0x148   :  { %3083 = vmatmul.mubr.f32.gmra.mrb[12].mxu1 %v3028_v34 }
 0x149   :  { %v3031_v36 = vpop.f32.mrb[14].mxu0 }
 0x14a   :  { %v265_v37 = vpop.f32.mrb[15].mxu0 }
 0x14b   :  { %3085 = vmatprep.mubr.f32.mxu1 %v265_v37 }
 0x14c   :  { %3086 = vmatmul.mubr.f32.gmra.mrb[14].mxu1 %v3031_v36 }
 0x203   :  { %v3066_v59 = vpop.f32.mrb[0].mxu1 }
 0x204   :  { %v369_v60 = vadd.f32 %v3066_v59, %v2617_v58  ;;  %v363_v61 = vpop.f32.mrb[1].mxu1 }
 0x205   :  { %v364_v62 = vadd.f32 %v2617_v58, %v363_v61 }
 0x206   :  { %v443_v1 = vmax.f32 %v369_v60, 0.0 }
 0x207   :  { %v442_v63 = vmax.f32 %v364_v62, 0.0  ;;  %v3069_v0 = vpop.f32.mrb[2].mxu1 }
 0x208   :  { %v379_v2 = vadd.f32 %v3069_v0, %v2617_v58  ;;  %v373_v3 = vpop.f32.mrb[3].mxu1 }
 0x209   :  { %v374_v4 = vadd.f32 %v2617_v58, %v373_v3  ;;  %3120 = vmatprep.mubr.f32.mxu0 %v442_v63  ;;  %v4369_v3 = vpop.permute.xlu0 %674 }
 0x20a   :  { %3121 = vmatmul.mubr.f32.vlgmr.msra.gmra.mrb[16].mxu0 %v443_v1  ;;  %v445_v7 = vmax.f32 %v379_v2, 0.0 }
 0x20b   :  { %v444_v5 = vmax.f32 %v374_v4, 0.0  ;;  %v3072_v6 = vpop.f32.mrb[4].mxu1 }
 0x20c   :  { %v389_v8 = vadd.f32 %v3072_v6, %v2617_v58  ;;  %v383_v10 = vpop.f32.mrb[5].mxu1 }
 0x20d   :  { %v384_v11 = vadd.f32 %v2617_v58, %v383_v10  ;;  %3123 = vmatprep.mubr.f32.mxu0 %v444_v5 }
 0x20e   :  { %3124 = vmatmul.mubr.f32.gmra.mrb[18].mxu0 %v445_v7  ;;  %v447_v14 = vmax.f32 %v389_v8, 0.0  ;;  %v4380_v8 = vpop.permute.xlu1 %679 }
 0x20f   :  { %v446_v12 = vmax.f32 %v384_v11, 0.0  ;;  %v3075_v13 = vpop.f32.mrb[6].mxu1 }
 0x210   :  { %v399_v15 = vadd.f32 %v3075_v13, %v2617_v58  ;;  %v393_v16 = vpop.f32.mrb[7].mxu1 }
 0x211   :  { %v394_v17 = vadd.f32 %v2617_v58, %v393_v16  ;;  %3126 = vmatprep.mubr.f32.mxu0 %v446_v12 }
 0x212   :  { %3127 = vmatmul.mubr.f32.gmra.mrb[20].mxu0 %v447_v14  ;;  %v449_v20 = vmax.f32 %v399_v15, 0.0 }
 0x213   :  { %v448_v18 = vmax.f32 %v394_v17, 0.0  ;;  %v3078_v19 = vpop.f32.mrb[8].mxu1 }
 0x214   :  { %v409_v21 = vadd.f32 %v3078_v19, %v2617_v58  ;;  %v403_v22 = vpop.f32.mrb[9].mxu1 }
 0x215   :  { %v404_v23 = vadd.f32 %v2617_v58, %v403_v22  ;;  %3129 = vmatprep.mubr.f32.mxu0 %v448_v18 }
 0x216   :  { %3130 = vmatmul.mubr.f32.gmra.mrb[22].mxu0 %v449_v20  ;;  %v451_v26 = vmax.f32 %v409_v21, 0.0  ;;  %v4396_v20 = vpop.permute.xlu0 %684 }
 0x217   :  { %v450_v24 = vmax.f32 %v404_v23, 0.0  ;;  %v3081_v25 = vpop.f32.mrb[10].mxu1 }
 0x218   :  { %v419_v27 = vadd.f32 %v3081_v25, %v2617_v58  ;;  %v413_v28 = vpop.f32.mrb[11].mxu1 }
 0x219   :  { %v414_v29 = vadd.f32 %v2617_v58, %v413_v28  ;;  %3132 = vmatprep.mubr.f32.mxu0 %v450_v24 }
 0x21a   :  { %3133 = vmatmul.mubr.f32.gmra.mrb[24].mxu0 %v451_v26  ;;  %v453_v32 = vmax.f32 %v419_v27, 0.0  ;;  %v4403_v26 = vpop.permute.xlu1 %689 }
 0x21b   :  { %v452_v30 = vmax.f32 %v414_v29, 0.0  ;;  %v3084_v31 = vpop.f32.mrb[12].mxu1 }
 0x21c   :  { %v429_v33 = vadd.f32 %v3084_v31, %v2617_v58  ;;  %v423_v34 = vpop.f32.mrb[13].mxu1 }
 0x21d   :  { %v424_v35 = vadd.f32 %v2617_v58, %v423_v34  ;;  %3135 = vmatprep.mubr.f32.mxu0 %v452_v30 }
 0x21e   :  { %3136 = vmatmul.mubr.f32.gmra.mrb[26].mxu0 %v453_v32  ;;  %v455_v38 = vmax.f32 %v429_v33, 0.0 }
 0x21f   :  { %v454_v36 = vmax.f32 %v424_v35, 0.0  ;;  %v3087_v37 = vpop.f32.mrb[14].mxu1 }
 0x220   :  { %v439_v39 = vadd.f32 %v3087_v37, %v2617_v58  ;;  %v433_v40 = vpop.f32.mrb[15].mxu1  ;;  %v4416_v37 = vpop.permute.xlu0 %694 }
 0x221   :  { %v434_v41 = vadd.f32 %v2617_v58, %v433_v40  ;;  %3138 = vmatprep.mubr.f32.mxu0 %v454_v36 }
 0x222   :  { %3139 = vmatmul.mubr.f32.gmra.mrb[28].mxu0 %v455_v38  ;;  %v457_v43 = vmax.f32 %v439_v39, 0.0 }
 0x223   :  { %v456_v42 = vmax.f32 %v434_v41, 0.0 }
 0x225   :  { %3141 = vmatprep.mubr.f32.mxu0 %v456_v42 }
 0x226   :  { %3142 = vmatmul.mubr.f32.gmra.mrb[30].mxu0 %v457_v43  ;;  %v4421_v43 = vpop.permute.xlu1 %699 }
 0x227   :  { %3211 = vmatprep.mubr.f32.mxu0 %v4244_v9 }
 0x2dd   :  { %v3122_v50 = vpop.f32.mrb[16].mxu0 }
 0x2de   :  { %v4344_v51 = vadd.f32 %v3122_v50, %v4338_v47  ;;  %v547_v9 = vpop.f32.mrb[17].mxu0 }
 0x2df   :  { %v4347_v52 = vadd.f32 %v4338_v47, %v547_v9 }
 0x2e0   :  { %v627_v54 = vmax.f32 %v4344_v51, 0.0 }
 0x2e1   :  { %v626_v55 = vmax.f32 %v4347_v52, 0.0  ;;  %v3125_v56 = vpop.f32.mrb[18].mxu0 }
 0x2e2   :  { %v723_v58 = vmul.f32 %v4333_v46, %v627_v54  ;;  %v4359_v59 = vadd.f32 %v3125_v56, %v4338_v47  ;;  %v557_v60 = vpop.f32.mrb[19].mxu0 }
 0x2e3   :  { %v722_v61 = vmul.f32 %v4329_v44, %v626_v55  ;;  %v4365_v62 = vadd.f32 %v4338_v47, %v557_v60 }
 0x2e4   :  { %v629_v0 = vmax.f32 %v4359_v59, 0.0 }
 0x2e5   :  { %v738_v63 = vadd.f32 %v723_v58, %v722_v61  ;;  %v628_v1 = vmax.f32 %v4365_v62, 0.0  ;;  %v3128_v2 = vpop.f32.mrb[20].mxu0 }
 0x2e6   :  { %v4372_v4 = vadd.f32 %v3128_v2, %v4338_v47  ;;  %v567_v5 = vpop.f32.mrb[21].mxu0  ;;  %v725_v10 = vmul.f32 %v4341_v49, %v629_v0 }
 0x2e7   :  { %v724_v6 = vmul.f32 %v4331_v45, %v628_v1  ;;  %v4378_v7 = vadd.f32 %v4338_v47, %v567_v5 }
 0x2e8   :  { %v631_v12 = vmax.f32 %v4372_v4, 0.0 }
 0x2e9   :  { %v739_v11 = vadd.f32 %v738_v63, %v724_v6  ;;  %v630_v13 = vmax.f32 %v4378_v7, 0.0  ;;  %v3131_v14 = vpop.f32.mrb[22].mxu0 }
 0x2ea   :  { %v4388_v15 = vadd.f32 %v3131_v14, %v4338_v47  ;;  %v577_v16 = vpop.f32.mrb[23].mxu0  ;;  %v727_v21 = vmul.f32 %v4353_v57, %v631_v12 }
 0x2eb   :  { %v726_v17 = vmul.f32 %v4349_v53, %v630_v13  ;;  %v740_v18 = vadd.f32 %v739_v11, %v725_v10  ;;  %v4394_v19 = vadd.f32 %v4338_v47, %v577_v16  ;;  %v4427_v10 = vpop.permute.xlu0 %704 }
 0x2ec   :  { %v633_v23 = vmax.f32 %v4388_v15, 0.0 }
 0x2ed   :  { %v741_v22 = vadd.f32 %v740_v18, %v726_v17  ;;  %v632_v24 = vmax.f32 %v4394_v19, 0.0  ;;  %v3134_v25 = vpop.f32.mrb[24].mxu0 }
 0x2ee   :  { %v4406_v27 = vadd.f32 %v3134_v25, %v4338_v47  ;;  %v587_v28 = vpop.f32.mrb[25].mxu0  ;;  %v729_v32 = vmul.f32 %v4380_v8, %v633_v23 }
 0x2ef   :  { %v728_v29 = vmul.f32 %v4369_v3, %v632_v24  ;;  %v742_v30 = vadd.f32 %v741_v22, %v727_v21  ;;  %v588_v31 = vadd.f32 %v4338_v47, %v587_v28  ;;  %v4430_v21 = vpop.permute.xlu1 %709 }
 0x2f0   :  { %v635_v34 = vmax.f32 %v4406_v27, 0.0 }
 0x2f1   :  { %v743_v33 = vadd.f32 %v742_v30, %v728_v29  ;;  %v634_v35 = vmax.f32 %v588_v31, 0.0  ;;  %v3137_v36 = vpop.f32.mrb[26].mxu0 }
 0x2f2   :  { %v603_v38 = vadd.f32 %v3137_v36, %v4338_v47  ;;  %v597_v39 = vpop.f32.mrb[27].mxu0  ;;  %v731_v50 = vmul.f32 %v4403_v26, %v635_v34  ;;  %v4436_v36 = vpop.permute.xlu0 %714 }
 0x2f3   :  { %v730_v40 = vmul.f32 %v4396_v20, %v634_v35  ;;  %v744_v41 = vadd.f32 %v743_v33, %v729_v32  ;;  %v598_v42 = vadd.f32 %v4338_v47, %v597_v39 }
 0x2f4   :  { %v637_v56 = vmax.f32 %v603_v38, 0.0 }
 0x2f5   :  { %v745_v9 = vadd.f32 %v744_v41, %v730_v40  ;;  %v636_v58 = vmax.f32 %v598_v42, 0.0  ;;  %v3140_v60 = vpop.f32.mrb[28].mxu0  ;;  %v4439_v40 = vpop.permute.xlu1 %719 }
 0x2f6   :  { %v613_v61 = vadd.f32 %v3140_v60, %v4338_v47  ;;  %v607_v63 = vpop.f32.mrb[29].mxu0  ;;  %v733_v11 = vmul.f32 %v4421_v43, %v637_v56 }
 0x2f7   :  { %v732_v2 = vmul.f32 %v4416_v37, %v636_v58  ;;  %v746_v5 = vadd.f32 %v745_v9, %v731_v50  ;;  %v608_v6 = vadd.f32 %v4338_v47, %v607_v63 }
 0x2f8   :  { %v639_v16 = vmax.f32 %v613_v61, 0.0 }
 0x2f9   :  { %v747_v14 = vadd.f32 %v746_v5, %v732_v2  ;;  %v638_v17 = vmax.f32 %v608_v6, 0.0  ;;  %v3143_v18 = vpop.f32.mrb[30].mxu0 }
 0x2fa   :  { %v623_v22 = vadd.f32 %v3143_v18, %v4338_v47  ;;  %v617_v25 = vpop.f32.mrb[31].mxu0  ;;  %v735_v30 = vmul.f32 %v4430_v21, %v639_v16 }
 0x2fb   :  { %v734_v27 = vmul.f32 %v4427_v10, %v638_v17  ;;  %v748_v28 = vadd.f32 %v747_v14, %v733_v11  ;;  %v618_v29 = vadd.f32 %v4338_v47, %v617_v25 }
 0x2fc   :  { %v641_v32 = vmax.f32 %v623_v22, 0.0 }
 0x2fd   :  { %v749_v31 = vadd.f32 %v748_v28, %v734_v27  ;;  %v640_v33 = vmax.f32 %v618_v29, 0.0 }
 0x2fe   :  { %v737_v41 = vmul.f32 %v4439_v40, %v641_v32 }
 0x2ff   :  { %v736_v38 = vmul.f32 %v4436_v36, %v640_v33  ;;  %v750_v39 = vadd.f32 %v749_v31, %v735_v30 }
 0x301   :  { %v751_v42 = vadd.f32 %v750_v39, %v736_v38 }
 0x303   :  { %v752_v50 = vadd.f32 %v751_v42, %v737_v41 }
 0x305   :  { %v753_v9 = vrot.slane %v752_v50, 4 }
 0x307   :  { %v754_v60 = vadd.f32 %v753_v9, %v752_v50 }
 0x309   :  { %v755_v61 = vrot.slane %v754_v60, 2 }
 0x30b   :  { %v756_v47 = vadd.f32 %v755_v61, %v754_v60 }
 0x30d   :  { %v757_v63 = vrot.slane %v756_v47, 1 }
 0x30f   :  { %v758_v2 = vadd.f32 %v757_v63, %v756_v47 }
 0x311   :  { %v759_v5 = vmul.f32 0.0625, %v758_v2 }
 0x313   :  { %v760_v6 = vsub.f32 %v626_v55, %v759_v5  ;;  %v761_v11 = vsub.f32 %v627_v54, %v759_v5  ;;  %v762_v14 = vsub.f32 %v628_v1, %v759_v5  ;;  %v763_v18 = vsub.f32 %v629_v0, %v759_v5 }
 0x314   :  { %v764_v22 = vsub.f32 %v630_v13, %v759_v5  ;;  %v765_v25 = vsub.f32 %v631_v12, %v759_v5  ;;  %v766_v27 = vsub.f32 %v632_v24, %v759_v5  ;;  %v767_v52 = vsub.f32 %v633_v23, %v759_v5 }
 0x315   :  { %v768_v51 = vsub.f32 %v634_v35, %v759_v5  ;;  %v769_v54 = vsub.f32 %v635_v34, %v759_v5  ;;  %v770_v55 = vsub.f32 %v636_v58, %v759_v5  ;;  %v771_v62 = vsub.f32 %v637_v56, %v759_v5 }
 0x316   :  { %v772_v1 = vsub.f32 %v638_v17, %v759_v5  ;;  %v773_v28 = vsub.f32 %v639_v16, %v759_v5  ;;  %v774_v59 = vsub.f32 %v640_v33, %v759_v5  ;;  %v775_v0 = vsub.f32 %v641_v32, %v759_v5 }
 0x317   :  { %v776_v7 = vmul.f32 %v760_v6, %v4329_v44  ;;  %v777_v13 = vmul.f32 %v761_v11, %v4333_v46  ;;  %v778_v4 = vmul.f32 %v762_v14, %v4331_v45  ;;  %v779_v24 = vmul.f32 %v763_v18, %v4341_v49 }
 0x318   :  { %v780_v15 = vmul.f32 %v764_v22, %v4349_v53  ;;  %v5132_v35 = vmov 0.0   ;;  %v781_v56 = vmul.f32 %v765_v25, %v4353_v57  ;;  %v782_v17 = vmul.f32 %v766_v27, %v4369_v3 }
 0x319   :  { %v792_v12 = vmul.f32 %v776_v7, %v776_v7  ;;  %v793_v19 = vmul.f32 %v777_v13, %v777_v13  ;;  %v794_v23 = vmul.f32 %v778_v4, %v778_v4  ;;  %3176 = vmatprep.mubr.msk.f32.mxu1 %vm4108_vm0, %v5132_v35  ;;  %v795_v58 = vmul.f32 %v779_v24, %v779_v24 }
 0x31a   :  { %v796_v29 = vmul.f32 %v780_v15, %v780_v15  ;;  %v783_v31 = vmul.f32 %v767_v52, %v4380_v8  ;;  %v797_v32 = vmul.f32 %v781_v56, %v781_v56  ;;  %v4469_v38 = vmul.f32 %v768_v51, %v4396_v20 }
 0x31b   :  { %v808_v34 = vadd.f32 %v793_v19, %v792_v12  ;;  %v798_v39 = vmul.f32 %v782_v17, %v782_v17  ;;  %v4472_v42 = vmul.f32 %v769_v54, %v4403_v26  ;;  %v4475_v60 = vmul.f32 %v770_v55, %v4416_v37 }
 0x31c   :  { %v799_v50 = vmul.f32 %v783_v31, %v783_v31  ;;  %v800_v61 = vmul.f32 %v4469_v38, %v4469_v38  ;;  %v4480_v63 = vmul.f32 %v771_v62, %v4421_v43  ;;  %v4485_v6 = vmul.f32 %v772_v1, %v4427_v10 }
 0x31d   :  { %v809_v16 = vadd.f32 %v808_v34, %v794_v23  ;;  %v801_v2 = vmul.f32 %v4472_v42, %v4472_v42  ;;  %v802_v11 = vmul.f32 %v4475_v60, %v4475_v60  ;;  %v4490_v18 = vmul.f32 %v773_v28, %v4430_v21 }
 0x31e   :  { %v803_v22 = vmul.f32 %v4480_v63, %v4480_v63  ;;  %v790_v27 = vmul.f32 %v774_v59, %v4436_v36  ;;  %v804_v52 = vmul.f32 %v4485_v6, %v4485_v6  ;;  %v4498_v54 = vmul.f32 %v775_v0, %v4439_v40 }
 0x31f   :  { %v810_v30 = vadd.f32 %v809_v16, %v795_v58  ;;  %v805_v55 = vmul.f32 %v4490_v18, %v4490_v18 }
 0x320   :  { %v806_v1 = vmul.f32 %v790_v27, %v790_v27  ;;  %v807_v12 = vmul.f32 %v4498_v54, %v4498_v54 }
 0x321   :  { %v811_v33 = vadd.f32 %v810_v30, %v796_v29 }
 0x323   :  { %v812_v41 = vadd.f32 %v811_v33, %v797_v32 }
 0x325   :  { %v813_v9 = vadd.f32 %v812_v41, %v798_v39  ;;  %v4509_v39 = vld [vmem:[%s5128_s8] ss:$0 sm:$0xff] }
 0x327   :  { %v814_v47 = vadd.f32 %v813_v9, %v799_v50 }
 0x329   :  { %v815_v5 = vadd.f32 %v814_v47, %v800_v61  ;;  %v4518_v47 = vld [vmem:[%s5129_s9] ss:$0 sm:$0xff] }
 0x32b   :  { %v816_v14 = vadd.f32 %v815_v5, %v801_v2 }
 0x32d   :  { %v817_v25 = vadd.f32 %v816_v14, %v802_v11 }
 0x32f   :  { %v818_v51 = vadd.f32 %v817_v25, %v803_v22 }
 0x331   :  { %v819_v62 = vadd.f32 %v818_v51, %v804_v52 }
 0x333   :  { %v820_v28 = vadd.f32 %v819_v62, %v805_v55 }
 0x335   :  { %v821_v19 = vadd.f32 %v820_v28, %v806_v1 }
 0x337   :  { %v822_v23 = vadd.f32 %v821_v19, %v807_v12 }
 0x339   :  { %v823_v34 = vrot.slane %v822_v23, 4 }
 0x33b   :  { %v824_v59 = vadd.f32 %v823_v34, %v822_v23 }
 0x33d   :  { %v825_v58 = vrot.slane %v824_v59, 2 }
 0x33f   :  { %v826_v16 = vadd.f32 %v825_v58, %v824_v59 }
 0x341   :  { %v827_v29 = vrot.slane %v826_v16, 1 }
 0x343   :  { %v828_v30 = vadd.f32 %v827_v29, %v826_v16 }
 0x345   :  { %v829_v32 = vmul.f32 0.0625, %v828_v30 }
 0x347   :  { %v830_v0 = vadd.f32 1e-05, %v829_v32 }
 0x349   :  { %3960 = vrsqrt.f32 %v830_v0 }
 0x353   :  { %v4504_v33 = vpop.eup %3960 }
 0x354   :  { %v846_v41 = vmul.f32 %v4504_v33, %v790_v27  ;;  %v832_v50 = vmul.f32 %v4504_v33, %v776_v7  ;;  %v833_v9 = vmul.f32 %v4504_v33, %v777_v13  ;;  %v834_v61 = vmul.f32 %v4504_v33, %v778_v4 }
 0x355   :  { %v835_v2 = vmul.f32 %v4504_v33, %v779_v24  ;;  %v836_v5 = vmul.f32 %v4504_v33, %v780_v15  ;;  %v837_v11 = vmul.f32 %v4504_v33, %v781_v56  ;;  %v838_v14 = vmul.f32 %v4504_v33, %v782_v17 }
 0x356   :  { %v869_v22 = vmul.f32 %v4509_v39, %v846_v41  ;;  %v855_v7 = vmul.f32 %v4509_v39, %v832_v50  ;;  %v856_v13 = vmul.f32 %v4509_v39, %v833_v9  ;;  %v857_v4 = vmul.f32 %v4509_v39, %v834_v61 }
 0x357   :  { %v858_v25 = vmul.f32 %v4509_v39, %v835_v2  ;;  %v859_v27 = vmul.f32 %v4509_v39, %v836_v5  ;;  %v860_v24 = vmul.f32 %v4509_v39, %v837_v11  ;;  %v839_v15 = vmul.f32 %v4504_v33, %v783_v31 }
 0x358   :  { %v878_v56 = vadd.f32 %v4518_v47, %v855_v7  ;;  %v879_v17 = vadd.f32 %v4518_v47, %v856_v13  ;;  %v880_v52 = vadd.f32 %v4518_v47, %v857_v4  ;;  %v861_v51 = vmul.f32 %v4509_v39, %v838_v14 }
 0x359   :  { %v881_v55 = vadd.f32 %v4518_v47, %v858_v25  ;;  %v882_v62 = vadd.f32 %v4518_v47, %v859_v27  ;;  %v883_v1 = vadd.f32 %v4518_v47, %v860_v24  ;;  %v862_v28 = vmul.f32 %v4509_v39, %v839_v15 }
 0x35a   :  { %v894_v12 = vmul.f32 %v878_v56, %v4329_v44  ;;  %v895_v31 = vmul.f32 %v879_v17, %v4333_v46  ;;  %v896_v19 = vmul.f32 %v880_v52, %v4331_v45  ;;  %v884_v23 = vadd.f32 %v4518_v47, %v861_v51 }
 0x35b   :  { %v897_v34 = vmul.f32 %v881_v55, %v4341_v49  ;;  %v898_v59 = vmul.f32 %v882_v62, %v4349_v53  ;;  %v899_v58 = vmul.f32 %v883_v1, %v4353_v57  ;;  %v885_v16 = vadd.f32 %v4518_v47, %v862_v28 }
 0x35c   :  { %910 = vst [vmem:[#allocation8] sm:$0xff] %v894_v12  ;;  %911 = vst [vmem:[#allocation8 + $0x18] sm:$0xff] %v895_v31  ;;  %v3682_v29 = vpack.c.bf16 %v895_v31, %v894_v12  ;;  %v900_v30 = vmul.f32 %v884_v23, %v4369_v3  ;;  %v840_v32 = vmul.f32 %v4504_v33, %v4469_v38  ;;  %v1144_v23 = vld [vmem:[#allocation5 + $0x88] sm:$0xff] }
 0x35d   :  { %912 = vst [vmem:[#allocation8 + $0x30] sm:$0xff] %v896_v19  ;;  %v841_v0 = vmul.f32 %v4504_v33, %v4472_v42  ;;  %913 = vst [vmem:[#allocation8 + $0x48] sm:$0xff] %v897_v34  ;;  %v3685_v41 = vpack.c.bf16 %v897_v34, %v896_v19  ;;  %v3688_v50 = vpack.c.bf16 %v899_v58, %v898_v59 }
 0x35e   :  { %914 = vst [vmem:[#allocation8 + $0x60] sm:$0xff] %v898_v59  ;;  %915 = vst [vmem:[#allocation8 + $0x78] sm:$0xff] %v899_v58  ;;  %v901_v9 = vmul.f32 %v885_v16, %v4380_v8  ;;  %v842_v61 = vmul.f32 %v4504_v33, %v4475_v60  ;;  %3683 = vmatpush3.bf16.msra.mxu1 %v3682_v29  ;;  %3706 = vmatprep.subr.bf16.mxu0 %v3682_v29  ;;  %v1145_v59 = vld [vmem:[#allocation5 + $0x90] sm:$0xff]  ;;  %v1146_v58 = vld [vmem:[#allocation5 + $0x98] sm:$0xff] }
 0x35f   :  { %916 = vst [vmem:[#allocation8 + $0x90] sm:$0xff] %v900_v30  ;;  %v863_v2 = vmul.f32 %v4509_v39, %v840_v32  ;;  %v864_v38 = vmul.f32 %v4509_v39, %v841_v0  ;;  %v843_v42 = vmul.f32 %v4504_v33, %v4480_v63  ;;  %3708 = vmatpush3.bf16.msra.mxu0 %v3682_v29  ;;  %v4597_v16 = vld [vmem:[%s5123_s3] sm:$0xff]  ;;  %v1148_v32 = vld [vmem:[#allocation5 + $0xa8] sm:$0xff] }
 0x360   :  { %3684 = vmatprep.subr.bf16.mxu1 %v5133_v48  ;;  %917 = vst [vmem:[#allocation8 + $0xa8] sm:$0xff] %v901_v9  ;;  %v3691_v5 = vpack.c.bf16 %v901_v9, %v900_v30  ;;  %v865_v11 = vmul.f32 %v4509_v39, %v842_v61  ;;  %v844_v60 = vmul.f32 %v4504_v33, %v4485_v6  ;;  %v1147_v30 = vld [vmem:[#allocation5 + $0xa0] sm:$0xff]  ;;  %v4600_v0 = vld [vmem:[#allocation2 + $0x8] sm:$0xff]  ;;  %v1149_v9 = vld [vmem:[#allocation5 + $0xb0] sm:$0xff] }
 0x361   :  { %3710 = vmatprep.subr.bf16.mxu0 %v3685_v41  ;;  %v886_v14 = vadd.f32 %v4518_v47, %v863_v2  ;;  %v887_v7 = vadd.f32 %v4518_v47, %v864_v38  ;;  %v866_v13 = vmul.f32 %v4509_v39, %v843_v42  ;;  %v845_v63 = vmul.f32 %v4504_v33, %v4490_v18  ;;  %v1150_v61 = vld [vmem:[#allocation5 + $0xb8] sm:$0xff]  ;;  %v4609_v38 = vld [vmem:[#allocation2 + $0x20] sm:$0xff] }
 0x362   :  { %v888_v4 = vadd.f32 %v4518_v47, %v865_v11  ;;  %v867_v25 = vmul.f32 %v4509_v39, %v844_v60  ;;  %v847_v27 = vmul.f32 %v4504_v33, %v4498_v54  ;;  %v892_v24 = vadd.f32 %v4518_v47, %v869_v22  ;;  %3686 = vmatpush3.bf16.msra.mxu1 %v3685_v41  ;;  %v4606_v2 = vld [vmem:[#allocation2 + $0x18] sm:$0xff]  ;;  %v1152_v11 = vld [vmem:[#allocation5 + $0xc8] sm:$0xff] }
 0x363   :  { %v902_v6 = vmul.f32 %v886_v14, %v4396_v20  ;;  %v903_v15 = vmul.f32 %v887_v7, %v4403_v26  ;;  %v889_v56 = vadd.f32 %v4518_v47, %v866_v13  ;;  %v868_v17 = vmul.f32 %v4509_v39, %v845_v63  ;;  %3712 = vmatpush3.bf16.msra.mxu0 %v3685_v41  ;;  %v4603_v41 = vld [vmem:[#allocation2 + $0x10] sm:$0xff]  ;;  %v4612_v60 = vld [vmem:[#allocation2 + $0x28] sm:$0xff]  ;;  %v1154_v63 = vld [vmem:[#allocation5 + $0xd8] sm:$0xff] }
 0x364   :  { %3687 = vmatprep.subr.bf16.mxu1 %v5133_v48  ;;  %v904_v18 = vmul.f32 %v888_v4, %v4416_v37  ;;  %v890_v52 = vadd.f32 %v4518_v47, %v867_v25  ;;  %v870_v54 = vmul.f32 %v4509_v39, %v847_v27  ;;  %3714 = vmatprep.subr.bf16.mxu0 %v3688_v50  ;;  %v4615_v14 = vld [vmem:[#allocation2 + $0x30] sm:$0xff]  ;;  %v4618_v4 = vld [vmem:[#allocation2 + $0x38] sm:$0xff]  ;;  %v4621_v25 = vld [vmem:[#allocation2 + $0x40] sm:$0xff] }
 0x365   :  { %918 = vst [vmem:[#allocation8 + $0xc0] sm:$0xff] %v902_v6  ;;  %919 = vst [vmem:[#allocation8 + $0xd8] sm:$0xff] %v903_v15  ;;  %v3694_v33 = vpack.c.bf16 %v903_v15, %v902_v6  ;;  %v905_v22 = vmul.f32 %v889_v56, %v4421_v43  ;;  %v891_v51 = vadd.f32 %v4518_v47, %v868_v17  ;;  %v1153_v13 = vld [vmem:[#allocation5 + $0xd0] sm:$0xff]  ;;  %v1156_v6 = vld [vmem:[#allocation5 + $0xe8] sm:$0xff] }
 0x366   :  { %v908_v55 = vmul.f32 %v892_v24, %v4436_v36  ;;  %920 = vst [vmem:[#allocation8 + $0xf0] sm:$0xff] %v904_v18  ;;  %v906_v62 = vmul.f32 %v890_v52, %v4427_v10  ;;  %v893_v1 = vadd.f32 %v4518_v47, %v870_v54  ;;  %3689 = vmatpush3.bf16.msra.mxu1 %v3688_v50  ;;  %v1143_v47 = vld [vmem:[#allocation5 + $0x80] sm:$0xff]  ;;  %v4624_v15 = vld [vmem:[#allocation2 + $0x48] sm:$0xff]  ;;  %v4627_v56 = vld [vmem:[#allocation2 + $0x50] sm:$0xff] }
 0x367   :  { %921 = vst [vmem:[#allocation8 + $0x108] sm:$0xff] %v905_v22  ;;  %v3697_v28 = vpack.c.bf16 %v905_v22, %v904_v18  ;;  %v907_v39 = vmul.f32 %v891_v51, %v4430_v21  ;;  %3716 = vmatpush3.bf16.msra.mxu0 %v3688_v50  ;;  %3690 = vmatprep.subr.bf16.mxu1 %v5133_v48  ;;  %v1155_v24 = vld [vmem:[#allocation5 + $0xe0] sm:$0xff]  ;;  %v1157_v18 = vld [vmem:[#allocation5 + $0xf0] sm:$0xff]  ;;  %v1158_v52 = vld [vmem:[#allocation5 + $0xf8] sm:$0xff] }
 0x368   :  { %924 = vst [vmem:[#allocation8 + $0x150] sm:$0xff] %v908_v55  ;;  %922 = vst [vmem:[#allocation8 + $0x120] sm:$0xff] %v906_v62  ;;  %v909_v12 = vmul.f32 %v893_v1, %v4439_v40  ;;  %3718 = vmatprep.subr.bf16.mxu0 %v3691_v5  ;;  %v3737_v34 = vpack.c.bf16 %v1144_v23, %v1143_v47  ;;  %v3741_v29 = vpack.c.bf16 %v1146_v58, %v1145_v59  ;;  %v4630_v54 = vld [vmem:[#allocation2 + $0x58] sm:$0xff]  ;;  %v4636_v51 = vld [vmem:[#allocation2 + $0x68] sm:$0xff] }
 0x369   :  { %923 = vst [vmem:[#allocation8 + $0x138] sm:$0xff] %v907_v39  ;;  %v3700_v31 = vpack.c.bf16 %v907_v39, %v906_v62  ;;  %v3745_v50 = vpack.c.bf16 %v1148_v32, %v1147_v30  ;;  %v3749_v42 = vpack.c.bf16 %v1150_v61, %v1149_v9  ;;  %v3757_v27 = vpack.c.bf16 %v1154_v63, %v1153_v13  ;;  %v4642_v62 = vld [vmem:[#allocation2 + $0x78] sm:$0xff]  ;;  %v1329_v1 = vld [vmem:[#allocation7 + $0x80] sm:$0xff]  ;;  %v1331_v39 = vld [vmem:[#allocation7 + $0x90] sm:$0xff] }
 0x36a   :  { %925 = vst [vmem:[#allocation8 + $0x168] sm:$0xff] %v909_v12  ;;  %v3703_v19 = vpack.c.bf16 %v909_v12, %v908_v55  ;;  %3692 = vmatpush3.bf16.msra.mxu1 %v3691_v5  ;;  %v3761_v17 = vpack.c.bf16 %v1156_v6, %v1155_v24  ;;  %v3765_v22 = vpack.c.bf16 %v1158_v52, %v1157_v18  ;;  %5146 = vst [vmem:[#allocation16_spill] sm:$0xff] %v4636_v51  ;;  %v4639_v55 = vld [vmem:[#allocation2 + $0x70] sm:$0xff]  ;;  %v1333_v47 = vld [vmem:[#allocation7 + $0xa0] sm:$0xff] }
 0x36b   :  { %3720 = vmatpush3.bf16.msra.mxu0 %v3691_v5  ;;  %3693 = vmatprep.subr.bf16.mxu1 %v5133_v48  ;;  %v1151_v5 = vld [vmem:[#allocation5 + $0xc0] sm:$0xff]  ;;  %5147 = vst [vmem:[#allocation17_spill] sm:$0xff] %v4639_v55  ;;  %5148 = vst [vmem:[#allocation18_spill] sm:$0xff] %v4642_v62  ;;  %v1334_v23 = vld [vmem:[#allocation7 + $0xa8] sm:$0xff] }
 0x36c   :  { %3722 = vmatprep.subr.bf16.mxu0 %v3694_v33  ;;  %v3753_v7 = vpack.c.bf16 %v1152_v11, %v1151_v5  ;;  %v1335_v59 = vld [vmem:[#allocation7 + $0xb0] sm:$0xff]  ;;  %v1336_v58 = vld [vmem:[#allocation7 + $0xb8] sm:$0xff]  ;;  %v1337_v30 = vld [vmem:[#allocation7 + $0xc0] sm:$0xff] }
 0x36d   :  { %v1338_v32 = vld [vmem:[#allocation7 + $0xc8] sm:$0xff]  ;;  %v1339_v9 = vld [vmem:[#allocation7 + $0xd0] sm:$0xff]  ;;  %v1340_v61 = vld [vmem:[#allocation7 + $0xd8] sm:$0xff] }
 0x36e   :  { %3695 = vmatpush3.bf16.msra.mxu1 %v3694_v33  ;;  %v1341_v5 = vld [vmem:[#allocation7 + $0xe0] sm:$0xff]  ;;  %v1342_v11 = vld [vmem:[#allocation7 + $0xe8] sm:$0xff] }
 0x36f   :  { %3724 = vmatpush3.bf16.msra.mxu0 %v3694_v33  ;;  %3696 = vmatprep.subr.bf16.mxu1 %v5133_v48  ;;  %v4633_v33 = vld [vmem:[#allocation2 + $0x60] sm:$0xff] }
 0x370   :  { %3726 = vmatprep.subr.bf16.mxu0 %v3697_v28  ;;  %5145 = vst [vmem:[#allocation15_spill] sm:$0xff] %v4633_v33 }
 0x372   :  { %3698 = vmatpush3.bf16.msra.mxu1 %v3697_v28 }
 0x373   :  { %3728 = vmatpush3.bf16.msra.mxu0 %v3697_v28  ;;  %3699 = vmatprep.subr.bf16.mxu1 %v5133_v48  ;;  %v1330_v28 = vld [vmem:[#allocation7 + $0x88] sm:$0xff] }
 0x374   :  { %3730 = vmatprep.subr.bf16.mxu0 %v3700_v31  ;;  %v3769_v12 = vpack.c.bf16 %v1330_v28, %v1329_v1 }
 0x376   :  { %3701 = vmatpush3.bf16.msra.mxu1 %v3700_v31 }
 0x377   :  { %3732 = vmatpush3.bf16.msra.mxu0 %v3700_v31  ;;  %3702 = vmatprep.subr.bf16.mxu1 %v5133_v48  ;;  %v1332_v31 = vld [vmem:[#allocation7 + $0x98] sm:$0xff] }
 0x378   :  { %3734 = vmatprep.subr.bf16.mxu0 %v3703_v19 }
 0x37a   :  { %3704 = vmatpush3.bf16.msra.mxu1 %v3703_v19 }
 0x37b   :  { %3736 = vmatpush3.bf16.msra.mxu0 %v3703_v19  ;;  %3738 = vmatprep.subr.bf16.mxu1 %v3737_v34  ;;  %v3773_v19 = vpack.c.bf16 %v1332_v31, %v1331_v39 }
 0x37c   :  { %3770 = vmatprep.subr.bf16.mxu0 %v3769_v12 }
 0x37d   :  { %3177 = vmatmul.mubr.f32.vlgmr.msra.gmra.mrb[16].mxu1 %v4597_v16 }
 0x37e   :  { %3212 = vmatmul.mubr.f32.vlgmr.msra.gmra.mrb[32].mxu0 %v4600_v0  ;;  %3740 = vmatpush3.bf16.msra.mxu1 %v3737_v34  ;;  %v3777_v34 = vpack.c.bf16 %v1334_v23, %v1333_v47 }
 0x37f   :  { %3214 = vmatprep.mubr.f32.mxu0 %v4603_v41  ;;  %3742 = vmatprep.subr.bf16.mxu1 %v3741_v29 }
 0x380   :  { %3772 = vmatpush3.bf16.msra.mxu0 %v3769_v12 }
 0x381   :  { %3774 = vmatprep.subr.bf16.mxu0 %v3773_v19 }
 0x382   :  { %3215 = vmatmul.mubr.f32.gmra.mrb[34].mxu0 %v4606_v2  ;;  %3744 = vmatpush3.bf16.msra.mxu1 %v3741_v29  ;;  %v3781_v29 = vpack.c.bf16 %v1336_v58, %v1335_v59  ;;  %v1343_v59 = vld [vmem:[#allocation7 + $0xf0] sm:$0xff]  ;;  %v1344_v58 = vld [vmem:[#allocation7 + $0xf8] sm:$0xff] }
 0x383   :  { %3217 = vmatprep.mubr.f32.mxu0 %v4609_v38  ;;  %3746 = vmatprep.subr.bf16.mxu1 %v3745_v50 }
 0x384   :  { %3776 = vmatpush3.bf16.msra.mxu0 %v3773_v19 }
 0x385   :  { %3778 = vmatprep.subr.bf16.mxu0 %v3777_v34 }
 0x386   :  { %3218 = vmatmul.mubr.f32.gmra.mrb[36].mxu0 %v4612_v60  ;;  %3748 = vmatpush3.bf16.msra.mxu1 %v3745_v50  ;;  %v3785_v50 = vpack.c.bf16 %v1338_v32, %v1337_v30  ;;  %v2622_v30 = vld [vmem:[%s5125_s5 + $0x1] ss:$0 sm:$0xff] }
 0x387   :  { %3220 = vmatprep.mubr.f32.mxu0 %v4615_v14  ;;  %3750 = vmatprep.subr.bf16.mxu1 %v3749_v42 }
 0x388   :  { %3780 = vmatpush3.bf16.msra.mxu0 %v3777_v34 }
 0x389   :  { %3782 = vmatprep.subr.bf16.mxu0 %v3781_v29 }
 0x38a   :  { %3221 = vmatmul.mubr.f32.gmra.mrb[38].mxu0 %v4618_v4  ;;  %3752 = vmatpush3.bf16.msra.mxu1 %v3749_v42  ;;  %v3789_v42 = vpack.c.bf16 %v1340_v61, %v1339_v9 }
 0x38b   :  { %3223 = vmatprep.mubr.f32.mxu0 %v4621_v25  ;;  %3754 = vmatprep.subr.bf16.mxu1 %v3753_v7 }
 0x38c   :  { %3784 = vmatpush3.bf16.msra.mxu0 %v3781_v29  ;;  %v3797_v29 = vpack.c.bf16 %v1344_v58, %v1343_v59 }
 0x38d   :  { %3786 = vmatprep.subr.bf16.mxu0 %v3785_v50 }
 0x38e   :  { %3224 = vmatmul.mubr.f32.gmra.mrb[40].mxu0 %v4624_v15  ;;  %3756 = vmatpush3.bf16.msra.mxu1 %v3753_v7  ;;  %v3793_v7 = vpack.c.bf16 %v1342_v11, %v1341_v5 }
 0x38f   :  { %3226 = vmatprep.mubr.f32.mxu0 %v4627_v56  ;;  %3758 = vmatprep.subr.bf16.mxu1 %v3757_v27 }
 0x390   :  { %3788 = vmatpush3.bf16.msra.mxu0 %v3785_v50 }
 0x391   :  { %3790 = vmatprep.subr.bf16.mxu0 %v3789_v42 }
 0x392   :  { %3227 = vmatmul.mubr.f32.gmra.mrb[42].mxu0 %v4630_v54  ;;  %3760 = vmatpush3.bf16.msra.mxu1 %v3757_v27 }
 0x393   :  { %3229 = vmatprep.mubr.f32.mxu0 %v4633_v33  ;;  %3762 = vmatprep.subr.bf16.mxu1 %v3761_v17 }
 0x394   :  { %3792 = vmatpush3.bf16.msra.mxu0 %v3789_v42 }
 0x395   :  { %3794 = vmatprep.subr.bf16.mxu0 %v3793_v7 }
 0x396   :  { %3230 = vmatmul.mubr.f32.gmra.mrb[44].mxu0 %v4636_v51  ;;  %3764 = vmatpush3.bf16.msra.mxu1 %v3761_v17 }
 0x397   :  { %3232 = vmatprep.mubr.f32.mxu0 %v4639_v55  ;;  %3766 = vmatprep.subr.bf16.mxu1 %v3765_v22 }
 0x398   :  { %3796 = vmatpush3.bf16.msra.mxu0 %v3793_v7 }
 0x399   :  { %3798 = vmatprep.subr.bf16.mxu0 %v3797_v29 }
 0x39a   :  { %3233 = vmatmul.mubr.f32.gmra.mrb[46].mxu0 %v4642_v62  ;;  %3768 = vmatpush3.bf16.msra.mxu1 %v3765_v22 }
 0x39b   :  { %3801 = vmatprep.subr.bf16.mxu1 %v5133_v48 }
 0x39c   :  { %3800 = vmatpush3.bf16.msra.mxu0 %v3797_v29 }
 0x450   :  { %v992_v13 = vpop.f32.mrb[16].mxu1 }
 0x451   :  { %v3213_v63 = vpop.f32.mrb[32].mxu0  ;;  %996 = vst [vmem:[#allocation9] sm:$0xff] %v992_v13  ;;  %v3178_v27 = vpop.f32.mrb[17].mxu1 }
 0x452   :  { %v1063_v24 = vpop.f32.mrb[33].mxu0 }
 0x453   :  { %3267 = vmatprep.mubr.f32.mxu1 %v1063_v24 }
 0x454   :  { %3268 = vmatmul.mubr.f32.vlgmr.msra.gmra.mrb[18].mxu1 %v3213_v63 }
 0x455   :  { %v3216_v6 = vpop.f32.mrb[34].mxu0 }
 0x456   :  { %v1073_v17 = vpop.f32.mrb[35].mxu0 }
 0x457   :  { %3270 = vmatprep.mubr.f32.mxu1 %v1073_v17 }
 0x458   :  { %3271 = vmatmul.mubr.f32.gmra.mrb[20].mxu1 %v3216_v6 }
 0x459   :  { %v3219_v18 = vpop.f32.mrb[36].mxu0 }
 0x45a   :  { %v1083_v52 = vpop.f32.mrb[37].mxu0 }
 0x45b   :  { %3273 = vmatprep.mubr.f32.mxu1 %v1083_v52 }
 0x45c   :  { %3274 = vmatmul.mubr.f32.gmra.mrb[22].mxu1 %v3219_v18 }
 0x45d   :  { %v3222_v22 = vpop.f32.mrb[38].mxu0 }
 0x45e   :  { %v1093_v1 = vpop.f32.mrb[39].mxu0 }
 0x45f   :  { %3276 = vmatprep.mubr.f32.mxu1 %v1093_v1 }
 0x460   :  { %3277 = vmatmul.mubr.f32.gmra.mrb[24].mxu1 %v3222_v22 }
 0x461   :  { %v3225_v28 = vpop.f32.mrb[40].mxu0 }
 0x462   :  { %v1103_v39 = vpop.f32.mrb[41].mxu0 }
 0x463   :  { %3279 = vmatprep.mubr.f32.mxu1 %v1103_v39 }
 0x464   :  { %3280 = vmatmul.mubr.f32.gmra.mrb[26].mxu1 %v3225_v28 }
 0x465   :  { %v3228_v12 = vpop.f32.mrb[42].mxu0 }
 0x466   :  { %v1113_v31 = vpop.f32.mrb[43].mxu0 }
 0x467   :  { %3282 = vmatprep.mubr.f32.mxu1 %v1113_v31 }
 0x468   :  { %3283 = vmatmul.mubr.f32.gmra.mrb[28].mxu1 %v3228_v12 }
 0x469   :  { %v3231_v19 = vpop.f32.mrb[44].mxu0 }
 0x46a   :  { %v1123_v47 = vpop.f32.mrb[45].mxu0 }
 0x46b   :  { %3285 = vmatprep.mubr.f32.mxu1 %v1123_v47 }
 0x46c   :  { %3286 = vmatmul.mubr.f32.gmra.mrb[30].mxu1 %v3231_v19 }
 0x46d   :  { %v3234_v23 = vpop.f32.mrb[46].mxu0 }
 0x46e   :  { %v1133_v34 = vpop.f32.mrb[47].mxu0 }
 0x46f   :  { %3288 = vmatprep.mubr.f32.mxu1 %v1133_v34 }
 0x470   :  { %3289 = vmatmul.mubr.f32.gmra.mrb[32].mxu1 %v3234_v23 }
 0x471   :  { %3379 = vmatprep.mubr.msk.f32.mxu1 %vm4108_vm0, %v5132_v35 }
 0x527   :  { %v3269_v32 = vpop.f32.mrb[18].mxu1 }
 0x528   :  { %v1239_v50 = vadd.f32 %v3269_v32, %v2622_v30  ;;  %v1233_v9 = vpop.f32.mrb[19].mxu1 }
 0x529   :  { %v1234_v61 = vadd.f32 %v2622_v30, %v1233_v9 }
 0x52a   :  { %v1313_v11 = vmax.f32 %v1239_v50, 0.0 }
 0x52b   :  { %v1312_v42 = vmax.f32 %v1234_v61, 0.0  ;;  %v3272_v5 = vpop.f32.mrb[20].mxu1 }
 0x52c   :  { %v1249_v7 = vadd.f32 %v3272_v5, %v2622_v30  ;;  %v1243_v13 = vpop.f32.mrb[21].mxu1 }
 0x52d   :  { %v1244_v63 = vadd.f32 %v2622_v30, %v1243_v13  ;;  %3323 = vmatprep.mubr.f32.mxu0 %v1312_v42 }
 0x52e   :  { %3324 = vmatmul.mubr.f32.vlgmr.msra.gmra.mrb[48].mxu0 %v1313_v11  ;;  %v1315_v6 = vmax.f32 %v1249_v7, 0.0 }
 0x52f   :  { %v1314_v27 = vmax.f32 %v1244_v63, 0.0  ;;  %v3275_v24 = vpop.f32.mrb[22].mxu1 }
 0x530   :  { %v1259_v17 = vadd.f32 %v3275_v24, %v2622_v30  ;;  %v1253_v18 = vpop.f32.mrb[23].mxu1 }
 0x531   :  { %v1254_v52 = vadd.f32 %v2622_v30, %v1253_v18  ;;  %3326 = vmatprep.mubr.f32.mxu0 %v1314_v27 }
 0x532   :  { %3327 = vmatmul.mubr.f32.gmra.mrb[50].mxu0 %v1315_v6  ;;  %v1317_v28 = vmax.f32 %v1259_v17, 0.0 }
 0x533   :  { %v1316_v22 = vmax.f32 %v1254_v52, 0.0  ;;  %v3278_v1 = vpop.f32.mrb[24].mxu1 }
 0x534   :  { %v1269_v39 = vadd.f32 %v3278_v1, %v2622_v30  ;;  %v1263_v12 = vpop.f32.mrb[25].mxu1 }
 0x535   :  { %v1264_v31 = vadd.f32 %v2622_v30, %v1263_v12  ;;  %3329 = vmatprep.mubr.f32.mxu0 %v1316_v22  ;;  %v4654_v12 = vld [vmem:[%s5127_s7 + $0x1] ss:$0 sm:$0xff] }
 0x536   :  { %3330 = vmatmul.mubr.f32.gmra.mrb[52].mxu0 %v1317_v28  ;;  %v1319_v23 = vmax.f32 %v1269_v39, 0.0  ;;  %v3981_v39 = vld [vmem:[#allocation2] sm:$0xff] }
 0x537   :  { %v1318_v19 = vmax.f32 %v1264_v31, 0.0  ;;  %v3281_v47 = vpop.f32.mrb[26].mxu1 }
 0x538   :  { %v1279_v34 = vadd.f32 %v3281_v47, %v2622_v30  ;;  %v1273_v59 = vpop.f32.mrb[27].mxu1 }
 0x539   :  { %v1274_v58 = vadd.f32 %v2622_v30, %v1273_v59  ;;  %3332 = vmatprep.mubr.f32.mxu0 %v1318_v19 }
 0x53a   :  { %3333 = vmatmul.mubr.f32.gmra.mrb[54].mxu0 %v1319_v23  ;;  %v1321_v50 = vmax.f32 %v1279_v34, 0.0 }
 0x53b   :  { %v1320_v29 = vmax.f32 %v1274_v58, 0.0  ;;  %v3284_v32 = vpop.f32.mrb[28].mxu1 }
 0x53c   :  { %v1289_v9 = vadd.f32 %v3284_v32, %v2622_v30  ;;  %v1283_v61 = vpop.f32.mrb[29].mxu1 }
 0x53d   :  { %v1284_v42 = vadd.f32 %v2622_v30, %v1283_v61  ;;  %3335 = vmatprep.mubr.f32.mxu0 %v1320_v29 }
 0x53e   :  { %3336 = vmatmul.mubr.f32.gmra.mrb[56].mxu0 %v1321_v50  ;;  %v1323_v7 = vmax.f32 %v1289_v9, 0.0 }
 0x53f   :  { %v1322_v5 = vmax.f32 %v1284_v42, 0.0  ;;  %v3287_v11 = vpop.f32.mrb[30].mxu1 }
 0x540   :  { %v1299_v13 = vadd.f32 %v3287_v11, %v2622_v30  ;;  %v1293_v63 = vpop.f32.mrb[31].mxu1 }
 0x541   :  { %v1294_v27 = vadd.f32 %v2622_v30, %v1293_v63  ;;  %3338 = vmatprep.mubr.f32.mxu0 %v1322_v5 }
 0x542   :  { %3339 = vmatmul.mubr.f32.gmra.mrb[58].mxu0 %v1323_v7  ;;  %v1325_v17 = vmax.f32 %v1299_v13, 0.0 }
 0x543   :  { %v1324_v24 = vmax.f32 %v1294_v27, 0.0  ;;  %v3290_v6 = vpop.f32.mrb[32].mxu1 }
 0x544   :  { %v1309_v18 = vadd.f32 %v3290_v6, %v2622_v30  ;;  %v1303_v52 = vpop.f32.mrb[33].mxu1 }
 0x545   :  { %v1304_v22 = vadd.f32 %v2622_v30, %v1303_v52  ;;  %3341 = vmatprep.mubr.f32.mxu0 %v1324_v24 }
 0x546   :  { %3342 = vmatmul.mubr.f32.gmra.mrb[60].mxu0 %v1325_v17  ;;  %v1327_v28 = vmax.f32 %v1309_v18, 0.0 }
 0x547   :  { %v1326_v1 = vmax.f32 %v1304_v22, 0.0 }
 0x549   :  { %3344 = vmatprep.mubr.f32.mxu0 %v1326_v1 }
 0x54a   :  { %3345 = vmatmul.mubr.f32.gmra.mrb[62].mxu0 %v1327_v28 }
 0x54b   :  { %3414 = vmatprep.mubr.f32.mxu0 %v3981_v39 }
 0x601   :  { %v3325_v31 = vpop.f32.mrb[48].mxu0 }
 0x602   :  { %v4657_v19 = vadd.f32 %v3325_v31, %v4654_v12  ;;  %v1419_v47 = vpop.f32.mrb[49].mxu0 }
 0x603   :  { %v4660_v30 = vadd.f32 %v4654_v12, %v1419_v47 }
 0x604   :  { %v5139_v23 = vmax.f32 %v4657_v19, 0.0 }
 0x605   :  { %v5140_v34 = vmax.f32 %v4660_v30, 0.0  ;;  %v3328_v59 = vpop.f32.mrb[50].mxu0 }
 0x606   :  { %v1515_v58 = vmul.f32 %v5139_v23, %v4333_v46  ;;  %v4668_v29 = vadd.f32 %v3328_v59, %v4654_v12  ;;  %v1429_v32 = vpop.f32.mrb[51].mxu0 }
 0x607   :  { %v1514_v50 = vmul.f32 %v5140_v34, %v4329_v44  ;;  %v4674_v9 = vadd.f32 %v4654_v12, %v1429_v32 }
 0x608   :  { %v5137_v42 = vmax.f32 %v4668_v29, 0.0 }
 0x609   :  { %v1530_v61 = vadd.f32 %v1515_v58, %v1514_v50  ;;  %v5138_v5 = vmax.f32 %v4674_v9, 0.0  ;;  %v3331_v11 = vpop.f32.mrb[52].mxu0 }
 0x60a   :  { %v4679_v7 = vadd.f32 %v3331_v11, %v4654_v12  ;;  %v1439_v13 = vpop.f32.mrb[53].mxu0  ;;  %v1517_v24 = vmul.f32 %v5137_v42, %v4341_v49 }
 0x60b   :  { %v1516_v63 = vmul.f32 %v5138_v5, %v4331_v45  ;;  %v4685_v27 = vadd.f32 %v4654_v12, %v1439_v13 }
 0x60c   :  { %v5135_v17 = vmax.f32 %v4679_v7, 0.0 }
 0x60d   :  { %v1531_v6 = vadd.f32 %v1530_v61, %v1516_v63  ;;  %v5136_v18 = vmax.f32 %v4685_v27, 0.0  ;;  %v3334_v52 = vpop.f32.mrb[54].mxu0 }
 0x60e   :  { %v4693_v22 = vadd.f32 %v3334_v52, %v4654_v12  ;;  %v1449_v1 = vpop.f32.mrb[55].mxu0  ;;  %v1519_v47 = vmul.f32 %v5135_v17, %v4353_v57 }
 0x60f   :  { %v1518_v28 = vmul.f32 %v5136_v18, %v4349_v53  ;;  %v1532_v39 = vadd.f32 %v1531_v6, %v1517_v24  ;;  %v4699_v31 = vadd.f32 %v4654_v12, %v1449_v1 }
 0x610   :  { %v1505_v58 = vmax.f32 %v4693_v22, 0.0 }
 0x611   :  { %v1533_v59 = vadd.f32 %v1532_v39, %v1518_v28  ;;  %v1504_v32 = vmax.f32 %v4699_v31, 0.0  ;;  %v3337_v50 = vpop.f32.mrb[56].mxu0 }
 0x612   :  { %v1465_v61 = vadd.f32 %v3337_v50, %v4654_v12  ;;  %v1459_v11 = vpop.f32.mrb[57].mxu0  ;;  %v1521_v6 = vmul.f32 %v1505_v58, %v4380_v8 }
 0x613   :  { %v1520_v13 = vmul.f32 %v1504_v32, %v4369_v3  ;;  %v1534_v63 = vadd.f32 %v1533_v59, %v1519_v47  ;;  %v1460_v24 = vadd.f32 %v4654_v12, %v1459_v11 }
 0x614   :  { %v1507_v1 = vmax.f32 %v1465_v61, 0.0 }
 0x615   :  { %v1535_v52 = vadd.f32 %v1534_v63, %v1520_v13  ;;  %v1506_v35 = vmax.f32 %v1460_v24, 0.0  ;;  %v3340_v48 = vpop.f32.mrb[58].mxu0 }
 0x616   :  { %v1475_v28 = vadd.f32 %v3340_v48, %v4654_v12  ;;  %v1469_v22 = vpop.f32.mrb[59].mxu0  ;;  %v1523_v17 = vmul.f32 %v1507_v1, %v4403_v26 }
 0x617   :  { %v1522_v39 = vmul.f32 %v1506_v35, %v4396_v20  ;;  %v1536_v31 = vadd.f32 %v1535_v52, %v1521_v6  ;;  %v1470_v50 = vadd.f32 %v4654_v12, %v1469_v22 }
 0x618   :  { %v1509_v47 = vmax.f32 %v1475_v28, 0.0 }
 0x619   :  { %v1537_v18 = vadd.f32 %v1536_v31, %v1522_v39  ;;  %v1508_v59 = vmax.f32 %v1470_v50, 0.0  ;;  %v3343_v11 = vpop.f32.mrb[60].mxu0 }
 0x61a   :  { %v1485_v42 = vadd.f32 %v3343_v11, %v4654_v12  ;;  %v1479_v13 = vpop.f32.mrb[61].mxu0  ;;  %v1525_v24 = vmul.f32 %v1509_v47, %v4421_v43 }
 0x61b   :  { %v1524_v61 = vmul.f32 %v1508_v59, %v4416_v37  ;;  %v1538_v63 = vadd.f32 %v1537_v18, %v1523_v17  ;;  %v1480_v48 = vadd.f32 %v4654_v12, %v1479_v13 }
 0x61c   :  { %v1511_v6 = vmax.f32 %v1485_v42, 0.0 }
 0x61d   :  { %v1539_v5 = vadd.f32 %v1538_v63, %v1524_v61  ;;  %v1510_v52 = vmax.f32 %v1480_v48, 0.0  ;;  %v3346_v22 = vpop.f32.mrb[62].mxu0 }
 0x61e   :  { %v1495_v23 = vadd.f32 %v3346_v22, %v4654_v12  ;;  %v1489_v39 = vpop.f32.mrb[63].mxu0  ;;  %v1527_v11 = vmul.f32 %v1511_v6, %v4430_v21 }
 0x61f   :  { %v1526_v28 = vmul.f32 %v1510_v52, %v4427_v10  ;;  %v1540_v31 = vadd.f32 %v1539_v5, %v1525_v24  ;;  %v1490_v50 = vadd.f32 %v4654_v12, %v1489_v39  ;;  %v5149_v12 = vmax.f32 %v4660_v30, 0.0 }
 0x620   :  { %v1513_v17 = vmax.f32 %v1495_v23, 0.0  ;;  %v5150_v23 = vmax.f32 %v4657_v19, 0.0 }
 0x621   :  { %v1541_v34 = vadd.f32 %v1540_v31, %v1526_v28  ;;  %v1512_v18 = vmax.f32 %v1490_v50, 0.0  ;;  %v5151_v31 = vmax.f32 %v4674_v9, 0.0  ;;  %v5152_v50 = vmax.f32 %v4668_v29, 0.0 }
 0x622   :  { %v1529_v42 = vmul.f32 %v1513_v17, %v4439_v40 }
 0x623   :  { %v1528_v13 = vmul.f32 %v1512_v18, %v4436_v36  ;;  %v1542_v62 = vadd.f32 %v1541_v34, %v1527_v11  ;;  %v5153_v11 = vmax.f32 %v4685_v27, 0.0 }
 0x625   :  { %v1543_v61 = vadd.f32 %v1542_v62, %v1528_v13 }
 0x627   :  { %v1544_v63 = vadd.f32 %v1543_v61, %v1529_v42 }
 0x629   :  { %v1545_v48 = vrot.slane %v1544_v63, 4 }
 0x62b   :  { %v1546_v22 = vadd.f32 %v1545_v48, %v1544_v63 }
 0x62d   :  { %v1547_v55 = vrot.slane %v1546_v22, 2 }
 0x62f   :  { %v1548_v51 = vadd.f32 %v1547_v55, %v1546_v22  ;;  %v5154_v55 = vmax.f32 %v4679_v7, 0.0 }
 0x631   :  { %v1549_v33 = vrot.slane %v1548_v51, 1 }
 0x633   :  { %v1550_v5 = vadd.f32 %v1549_v33, %v1548_v51 }
 0x635   :  { %v1551_v24 = vmul.f32 0.0625, %v1550_v5 }
 0x637   :  { %v1552_v39 = vsub.f32 %v5149_v12, %v1551_v24  ;;  %v1553_v28 = vsub.f32 %v5150_v23, %v1551_v24  ;;  %v1554_v34 = vsub.f32 %v5151_v31, %v1551_v24  ;;  %v1555_v62 = vsub.f32 %v5152_v50, %v1551_v24 }
 0x638   :  { %v1556_v13 = vsub.f32 %v5153_v11, %v1551_v24  ;;  %v1557_v42 = vsub.f32 %v5154_v55, %v1551_v24  ;;  %v1558_v33 = vsub.f32 %v1504_v32, %v1551_v24  ;;  %v1559_v51 = vsub.f32 %v1505_v58, %v1551_v24 }
 0x639   :  { %v1560_v61 = vsub.f32 %v1506_v35, %v1551_v24  ;;  %v1561_v30 = vsub.f32 %v1507_v1, %v1551_v24  ;;  %v1562_v63 = vsub.f32 %v1508_v59, %v1551_v24  ;;  %v1563_v48 = vsub.f32 %v1509_v47, %v1551_v24 }
 0x63a   :  { %v1564_v19 = vsub.f32 %v1510_v52, %v1551_v24  ;;  %v1565_v22 = vsub.f32 %v1511_v6, %v1551_v24  ;;  %v1566_v5 = vsub.f32 %v1512_v18, %v1551_v24  ;;  %v1567_v9 = vsub.f32 %v1513_v17, %v1551_v24 }
 0x63b   :  { %v1568_v12 = vmul.f32 %v1552_v39, %v4329_v44  ;;  %v1569_v29 = vmul.f32 %v1553_v28, %v4333_v46  ;;  %v1570_v27 = vmul.f32 %v1554_v34, %v4331_v45  ;;  %v1571_v7 = vmul.f32 %v1555_v62, %v4341_v49 }
 0x63c   :  { %v1572_v58 = vmul.f32 %v1556_v13, %v4349_v53  ;;  %v1573_v1 = vmul.f32 %v1557_v42, %v4353_v57  ;;  %v1574_v6 = vmul.f32 %v1558_v33, %v4369_v3  ;;  %v1575_v18 = vmul.f32 %v1559_v51, %v4380_v8 }
 0x63d   :  { %v1584_v23 = vmul.f32 %v1568_v12, %v1568_v12  ;;  %v1585_v31 = vmul.f32 %v1569_v29, %v1569_v29  ;;  %v1586_v35 = vmul.f32 %v1570_v27, %v1570_v27  ;;  %v1587_v47 = vmul.f32 %v1571_v7, %v1571_v7 }
 0x63e   :  { %v1588_v52 = vmul.f32 %v1572_v58, %v1572_v58  ;;  %v1589_v24 = vmul.f32 %v1573_v1, %v1573_v1  ;;  %v4745_v28 = vmul.f32 %v1560_v61, %v4396_v20  ;;  %v1590_v34 = vmul.f32 %v1574_v6, %v1574_v6 }
 0x63f   :  { %v1600_v32 = vadd.f32 %v1585_v31, %v1584_v23  ;;  %v4748_v62 = vmul.f32 %v1561_v30, %v4403_v26  ;;  %v1591_v11 = vmul.f32 %v1575_v18, %v1575_v18  ;;  %v4751_v55 = vmul.f32 %v1562_v63, %v4416_v37 }
 0x640   :  { %v1592_v42 = vmul.f32 %v4745_v28, %v4745_v28  ;;  %v4756_v51 = vmul.f32 %v1563_v48, %v4421_v43  ;;  %v4761_v31 = vmul.f32 %v1564_v19, %v4427_v10  ;;  %v4766_v63 = vmul.f32 %v1565_v22, %v4430_v21 }
 0x641   :  { %v1601_v59 = vadd.f32 %v1600_v32, %v1586_v35  ;;  %v1593_v61 = vmul.f32 %v4748_v62, %v4748_v62  ;;  %v1594_v30 = vmul.f32 %v4751_v55, %v4751_v55  ;;  %v1582_v48 = vmul.f32 %v1566_v5, %v4436_v36 }
 0x642   :  { %v1595_v32 = vmul.f32 %v4756_v51, %v4756_v51  ;;  %v4774_v19 = vmul.f32 %v1567_v9, %v4439_v40 }
 0x643   :  { %v1602_v17 = vadd.f32 %v1601_v59, %v1587_v47  ;;  %v1596_v59 = vmul.f32 %v4761_v31, %v4761_v31 }
 0x645   :  { %v1603_v39 = vadd.f32 %v1602_v17, %v1588_v52  ;;  %v1597_v17 = vmul.f32 %v4766_v63, %v4766_v63 }
 0x647   :  { %v1604_v50 = vadd.f32 %v1603_v39, %v1589_v24  ;;  %v1598_v39 = vmul.f32 %v1582_v48, %v1582_v48 }
 0x649   :  { %v1605_v13 = vadd.f32 %v1604_v50, %v1590_v34  ;;  %v1599_v34 = vmul.f32 %v4774_v19, %v4774_v19 }
 0x64b   :  { %v1606_v33 = vadd.f32 %v1605_v13, %v1591_v11 }
 0x64d   :  { %v1607_v23 = vadd.f32 %v1606_v33, %v1592_v42 }
 0x64f   :  { %v1608_v35 = vadd.f32 %v1607_v23, %v1593_v61 }
 0x651   :  { %v1609_v47 = vadd.f32 %v1608_v35, %v1594_v30 }
 0x653   :  { %v1610_v52 = vadd.f32 %v1609_v47, %v1595_v32  ;;  %v4785_v32 = vld [vmem:[%s5128_s8 + $0x1] ss:$0 sm:$0xff] }
 0x655   :  { %v1611_v24 = vadd.f32 %v1610_v52, %v1596_v59 }
 0x657   :  { %v1612_v22 = vadd.f32 %v1611_v24, %v1597_v17  ;;  %v4794_v24 = vld [vmem:[%s5129_s9 + $0x1] ss:$0 sm:$0xff] }
 0x659   :  { %v1613_v50 = vadd.f32 %v1612_v22, %v1598_v39 }
 0x65b   :  { %v1614_v11 = vadd.f32 %v1613_v50, %v1599_v34 }
 0x65d   :  { %v1615_v13 = vrot.slane %v1614_v11, 4 }
 0x65f   :  { %v1616_v5 = vadd.f32 %v1615_v13, %v1614_v11 }
 0x661   :  { %v1617_v42 = vrot.slane %v1616_v5, 2 }
 0x663   :  { %v1618_v33 = vadd.f32 %v1617_v42, %v1616_v5 }
 0x665   :  { %v1619_v61 = vrot.slane %v1618_v33, 1 }
 0x667   :  { %v1620_v23 = vadd.f32 %v1619_v61, %v1618_v33 }
 0x669   :  { %v1621_v30 = vmul.f32 0.0625, %v1620_v23 }
 0x66b   :  { %v1622_v9 = vadd.f32 1e-05, %v1621_v30 }
 0x66d   :  { %3962 = vrsqrt.f32 %v1622_v9 }
 0x677   :  { %v4780_v35 = vpop.eup %3962 }
 0x678   :  { %v1638_v47 = vmul.f32 %v4780_v35, %v1582_v48  ;;  %v1624_v59 = vmul.f32 %v4780_v35, %v1568_v12  ;;  %v1625_v52 = vmul.f32 %v4780_v35, %v1569_v29  ;;  %v1626_v17 = vmul.f32 %v4780_v35, %v1570_v27 }
 0x679   :  { %v1627_v39 = vmul.f32 %v4780_v35, %v1571_v7  ;;  %v1628_v22 = vmul.f32 %v4780_v35, %v1572_v58  ;;  %v1629_v34 = vmul.f32 %v4780_v35, %v1573_v1  ;;  %v1630_v50 = vmul.f32 %v4780_v35, %v1574_v6 }
 0x67a   :  { %v1662_v48 = vmul.f32 %v4785_v32, %v1638_v47  ;;  %v1648_v12 = vmul.f32 %v4785_v32, %v1624_v59  ;;  %v1649_v29 = vmul.f32 %v4785_v32, %v1625_v52  ;;  %v1650_v27 = vmul.f32 %v4785_v32, %v1626_v17 }
 0x67b   :  { %v1651_v11 = vmul.f32 %v4785_v32, %v1627_v39  ;;  %v1652_v13 = vmul.f32 %v4785_v32, %v1628_v22  ;;  %v1653_v7 = vmul.f32 %v4785_v32, %v1629_v34  ;;  %v1631_v58 = vmul.f32 %v4780_v35, %v1575_v18 }
 0x67c   :  { %v1672_v1 = vadd.f32 %v4794_v24, %v1648_v12  ;;  %v1673_v6 = vadd.f32 %v4794_v24, %v1649_v29  ;;  %v1674_v5 = vadd.f32 %v4794_v24, %v1650_v27  ;;  %v1654_v42 = vmul.f32 %v4785_v32, %v1630_v50 }
 0x67d   :  { %v1675_v33 = vadd.f32 %v4794_v24, %v1651_v11  ;;  %v1676_v61 = vadd.f32 %v4794_v24, %v1652_v13  ;;  %v1677_v23 = vadd.f32 %v4794_v24, %v1653_v7  ;;  %v1655_v30 = vmul.f32 %v4785_v32, %v1631_v58 }
 0x67e   :  { %v1688_v9 = vmul.f32 %v1672_v1, %v4329_v44  ;;  %v1689_v18 = vmul.f32 %v1673_v6, %v4333_v46  ;;  %v1690_v47 = vmul.f32 %v1674_v5, %v4331_v45  ;;  %v1678_v59 = vadd.f32 %v4794_v24, %v1654_v42 }
 0x67f   :  { %v1691_v52 = vmul.f32 %v1675_v33, %v4341_v49  ;;  %v1692_v17 = vmul.f32 %v1676_v61, %v4349_v53  ;;  %v1693_v39 = vmul.f32 %v1677_v23, %v4353_v57  ;;  %v1679_v22 = vadd.f32 %v4794_v24, %v1655_v30 }
 0x680   :  { %1704 = vst [vmem:[#allocation8 + $0x8] sm:$0xff] %v1688_v9  ;;  %1705 = vst [vmem:[#allocation8 + $0x20] sm:$0xff] %v1689_v18  ;;  %v3802_v34 = vpack.c.bf16 %v1689_v18, %v1688_v9  ;;  %v1694_v50 = vmul.f32 %v1678_v59, %v4369_v3  ;;  %v1632_v12 = vmul.f32 %v4780_v35, %v4745_v28  ;;  %v5155_v1 = vmov 0.0|0.0  }
 0x681   :  { %1706 = vst [vmem:[#allocation8 + $0x38] sm:$0xff] %v1690_v47  ;;  %v1633_v29 = vmul.f32 %v4780_v35, %v4748_v62  ;;  %1707 = vst [vmem:[#allocation8 + $0x50] sm:$0xff] %v1691_v52  ;;  %v3805_v27 = vpack.c.bf16 %v1691_v52, %v1690_v47  ;;  %v3808_v11 = vpack.c.bf16 %v1693_v39, %v1692_v17 }
 0x682   :  { %1708 = vst [vmem:[#allocation8 + $0x68] sm:$0xff] %v1692_v17  ;;  %1709 = vst [vmem:[#allocation8 + $0x80] sm:$0xff] %v1693_v39  ;;  %v1695_v13 = vmul.f32 %v1679_v22, %v4380_v8  ;;  %v1634_v7 = vmul.f32 %v4780_v35, %v4751_v55  ;;  %3803 = vmatpush3.bf16.msra.mxu1 %v3802_v34  ;;  %3826 = vmatprep.subr.bf16.mxu0 %v3802_v34 }
 0x683   :  { %1710 = vst [vmem:[#allocation8 + $0x98] sm:$0xff] %v1694_v50  ;;  %v1656_v58 = vmul.f32 %v4785_v32, %v1632_v12  ;;  %v1657_v28 = vmul.f32 %v4785_v32, %v1633_v29  ;;  %v1635_v62 = vmul.f32 %v4780_v35, %v4756_v51  ;;  %3828 = vmatpush3.bf16.msra.mxu0 %v3802_v34 }
 0x684   :  { %3804 = vmatprep.subr.bf16.mxu1 %v5155_v1  ;;  %1711 = vst [vmem:[#allocation8 + $0xb0] sm:$0xff] %v1695_v13  ;;  %v3811_v6 = vpack.c.bf16 %v1695_v13, %v1694_v50  ;;  %v1658_v5 = vmul.f32 %v4785_v32, %v1634_v7  ;;  %v1636_v55 = vmul.f32 %v4780_v35, %v4761_v31 }
 0x685   :  { %3830 = vmatprep.subr.bf16.mxu0 %v3805_v27  ;;  %v1680_v42 = vadd.f32 %v4794_v24, %v1656_v58  ;;  %v1681_v33 = vadd.f32 %v4794_v24, %v1657_v28  ;;  %v1659_v61 = vmul.f32 %v4785_v32, %v1635_v62  ;;  %v1637_v51 = vmul.f32 %v4780_v35, %v4766_v63  ;;  %v1939_v58 = vld [vmem:[#allocation5 + $0x110] sm:$0xff]  ;;  %v1940_v28 = vld [vmem:[#allocation5 + $0x118] sm:$0xff] }
 0x686   :  { %v1682_v23 = vadd.f32 %v4794_v24, %v1658_v5  ;;  %v1660_v30 = vmul.f32 %v4785_v32, %v1636_v55  ;;  %v1639_v9 = vmul.f32 %v4780_v35, %v4774_v19  ;;  %v1686_v18 = vadd.f32 %v4794_v24, %v1662_v48  ;;  %3806 = vmatpush3.bf16.msra.mxu1 %v3805_v27  ;;  %v1942_v5 = vld [vmem:[#allocation5 + $0x128] sm:$0xff] }
 0x687   :  { %v1696_v31 = vmul.f32 %v1680_v42, %v4396_v20  ;;  %v1697_v47 = vmul.f32 %v1681_v33, %v4403_v26  ;;  %v1683_v59 = vadd.f32 %v4794_v24, %v1659_v61  ;;  %v1661_v52 = vmul.f32 %v4785_v32, %v1637_v51  ;;  %3832 = vmatpush3.bf16.msra.mxu0 %v3805_v27  ;;  %v1943_v42 = vld [vmem:[#allocation5 + $0x130] sm:$0xff]  ;;  %v1944_v33 = vld [vmem:[#allocation5 + $0x138] sm:$0xff]  ;;  %v1945_v51 = vld [vmem:[#allocation5 + $0x140] sm:$0xff] }
 0x688   :  { %3807 = vmatprep.subr.bf16.mxu1 %v5155_v1  ;;  %v1698_v63 = vmul.f32 %v1682_v23, %v4416_v37  ;;  %v1684_v17 = vadd.f32 %v4794_v24, %v1660_v30  ;;  %v1663_v19 = vmul.f32 %v4785_v32, %v1639_v9  ;;  %3834 = vmatprep.subr.bf16.mxu0 %v3808_v11  ;;  %v1946_v23 = vld [vmem:[#allocation5 + $0x148] sm:$0xff]  ;;  %v1952_v9 = vld [vmem:[#allocation5 + $0x178] sm:$0xff] }
 0x689   :  { %1712 = vst [vmem:[#allocation8 + $0xc8] sm:$0xff] %v1696_v31  ;;  %1713 = vst [vmem:[#allocation8 + $0xe0] sm:$0xff] %v1697_v47  ;;  %v3814_v35 = vpack.c.bf16 %v1697_v47, %v1696_v31  ;;  %v1699_v48 = vmul.f32 %v1683_v59, %v4421_v43  ;;  %v1685_v39 = vadd.f32 %v4794_v24, %v1661_v52  ;;  %v1950_v30 = vld [vmem:[#allocation5 + $0x168] sm:$0xff]  ;;  %v2125_v59 = vld [vmem:[#allocation7 + $0x110] sm:$0xff] }
 0x68a   :  { %v1702_v22 = vmul.f32 %v1686_v18, %v4436_v36  ;;  %1714 = vst [vmem:[#allocation8 + $0xf8] sm:$0xff] %v1698_v63  ;;  %v1700_v34 = vmul.f32 %v1684_v17, %v4427_v10  ;;  %v1687_v50 = vadd.f32 %v4794_v24, %v1663_v19  ;;  %3809 = vmatpush3.bf16.msra.mxu1 %v3808_v11  ;;  %v1937_v24 = vld [vmem:[#allocation5 + $0x100] sm:$0xff]  ;;  %v5158_v31 = vld [vmem:[#allocation17_spill] sm:$0xff]  ;;  %v2126_v52 = vld [vmem:[#allocation7 + $0x118] sm:$0xff] }
 0x68b   :  { %1715 = vst [vmem:[#allocation8 + $0x110] sm:$0xff] %v1699_v48  ;;  %v3817_v12 = vpack.c.bf16 %v1699_v48, %v1698_v63  ;;  %v1701_v32 = vmul.f32 %v1685_v39, %v4430_v21  ;;  %3836 = vmatpush3.bf16.msra.mxu0 %v3808_v11  ;;  %3810 = vmatprep.subr.bf16.mxu1 %v5155_v1  ;;  %v1938_v11 = vld [vmem:[#allocation5 + $0x108] sm:$0xff]  ;;  %v5157_v18 = vld [vmem:[#allocation16_spill] sm:$0xff]  ;;  %v2129_v48 = vld [vmem:[#allocation7 + $0x130] sm:$0xff] }
 0x68c   :  { %1718 = vst [vmem:[#allocation8 + $0x158] sm:$0xff] %v1702_v22  ;;  %1716 = vst [vmem:[#allocation8 + $0x128] sm:$0xff] %v1700_v34  ;;  %v1703_v29 = vmul.f32 %v1687_v50, %v4439_v40  ;;  %3838 = vmatprep.subr.bf16.mxu0 %v3811_v6  ;;  %v3857_v7 = vpack.c.bf16 %v1938_v11, %v1937_v24  ;;  %v3861_v62 = vpack.c.bf16 %v1940_v28, %v1939_v58  ;;  %v2124_v47 = vld [vmem:[#allocation7 + $0x108] sm:$0xff]  ;;  %v2127_v17 = vld [vmem:[#allocation7 + $0x120] sm:$0xff] }
 0x68d   :  { %1717 = vst [vmem:[#allocation8 + $0x140] sm:$0xff] %v1701_v32  ;;  %v3820_v27 = vpack.c.bf16 %v1701_v32, %v1700_v34  ;;  %v3869_v61 = vpack.c.bf16 %v1944_v33, %v1943_v42  ;;  %v3893_v63 = vpack.c.bf16 %v2126_v52, %v2125_v59  ;;  %v2128_v19 = vld [vmem:[#allocation7 + $0x128] sm:$0xff]  ;;  %v2130_v39 = vld [vmem:[#allocation7 + $0x138] sm:$0xff]  ;;  %v2131_v34 = vld [vmem:[#allocation7 + $0x140] sm:$0xff] }
 0x68e   :  { %1719 = vst [vmem:[#allocation8 + $0x170] sm:$0xff] %v1703_v29  ;;  %v3823_v13 = vpack.c.bf16 %v1703_v29, %v1702_v22  ;;  %3812 = vmatpush3.bf16.msra.mxu1 %v3811_v6  ;;  %v3901_v22 = vpack.c.bf16 %v2130_v39, %v2129_v48  ;;  %v2132_v50 = vld [vmem:[#allocation7 + $0x148] sm:$0xff]  ;;  %v2133_v32 = vld [vmem:[#allocation7 + $0x150] sm:$0xff]  ;;  %v2134_v29 = vld [vmem:[#allocation7 + $0x158] sm:$0xff] }
 0x68f   :  { %3840 = vmatpush3.bf16.msra.mxu0 %v3811_v6  ;;  %3813 = vmatprep.subr.bf16.mxu1 %v5155_v1  ;;  %v1941_v6 = vld [vmem:[#allocation5 + $0x120] sm:$0xff]  ;;  %v2136_v24 = vld [vmem:[#allocation7 + $0x168] sm:$0xff] }
 0x690   :  { %3842 = vmatprep.subr.bf16.mxu0 %v3814_v35  ;;  %v3865_v55 = vpack.c.bf16 %v1942_v5, %v1941_v6 }
 0x692   :  { %3815 = vmatpush3.bf16.msra.mxu1 %v3814_v35 }
 0x693   :  { %3844 = vmatpush3.bf16.msra.mxu0 %v3814_v35  ;;  %3816 = vmatprep.subr.bf16.mxu1 %v5155_v1  ;;  %v3897_v35 = vpack.c.bf16 %v2128_v19, %v2127_v17 }
 0x694   :  { %3846 = vmatprep.subr.bf16.mxu0 %v3817_v12 }
 0x696   :  { %3818 = vmatpush3.bf16.msra.mxu1 %v3817_v12 }
 0x697   :  { %3848 = vmatpush3.bf16.msra.mxu0 %v3817_v12  ;;  %3819 = vmatprep.subr.bf16.mxu1 %v5155_v1  ;;  %v3905_v12 = vpack.c.bf16 %v2132_v50, %v2131_v34 }
 0x698   :  { %3850 = vmatprep.subr.bf16.mxu0 %v3820_v27 }
 0x69a   :  { %3821 = vmatpush3.bf16.msra.mxu1 %v3820_v27 }
 0x69b   :  { %3852 = vmatpush3.bf16.msra.mxu0 %v3820_v27  ;;  %3822 = vmatprep.subr.bf16.mxu1 %v5155_v1  ;;  %v3909_v27 = vpack.c.bf16 %v2134_v29, %v2133_v32 }
 0x69c   :  { %3854 = vmatprep.subr.bf16.mxu0 %v3823_v13 }
 0x69e   :  { %3824 = vmatpush3.bf16.msra.mxu1 %v3823_v13 }
 0x69f   :  { %3856 = vmatpush3.bf16.msra.mxu0 %v3823_v13  ;;  %3858 = vmatprep.subr.bf16.mxu1 %v3857_v7  ;;  %v2135_v13 = vld [vmem:[#allocation7 + $0x160] sm:$0xff] }
 0x6a0   :  { %v3913_v11 = vpack.c.bf16 %v2136_v24, %v2135_v13 }
 0x6a1   :  { %3380 = vmatmul.mubr.f32.vlgmr.msra.gmra.mrb[34].mxu1 %v4597_v16  ;;  %v3873_v16 = vpack.c.bf16 %v1946_v23, %v1945_v51 }
 0x6a2   :  { %3415 = vmatmul.mubr.f32.vlgmr.msra.gmra.mrb[64].mxu0 %v4600_v0  ;;  %3860 = vmatpush3.bf16.msra.mxu1 %v3857_v7  ;;  %v1947_v0 = vld [vmem:[#allocation5 + $0x150] sm:$0xff] }
 0x6a3   :  { %3417 = vmatprep.mubr.f32.mxu0 %v4603_v41  ;;  %3862 = vmatprep.subr.bf16.mxu1 %v3861_v62  ;;  %v1948_v41 = vld [vmem:[#allocation5 + $0x158] sm:$0xff] }
 0x6a6   :  { %3418 = vmatmul.mubr.f32.gmra.mrb[66].mxu0 %v4606_v2  ;;  %3864 = vmatpush3.bf16.msra.mxu1 %v3861_v62  ;;  %v3877_v2 = vpack.c.bf16 %v1948_v41, %v1947_v0 }
 0x6a7   :  { %3420 = vmatprep.mubr.f32.mxu0 %v4609_v38  ;;  %3866 = vmatprep.subr.bf16.mxu1 %v3865_v55  ;;  %v1949_v38 = vld [vmem:[#allocation5 + $0x160] sm:$0xff] }
 0x6aa   :  { %3421 = vmatmul.mubr.f32.gmra.mrb[68].mxu0 %v4612_v60  ;;  %3868 = vmatpush3.bf16.msra.mxu1 %v3865_v55  ;;  %v3881_v60 = vpack.c.bf16 %v1950_v30, %v1949_v38 }
 0x6ab   :  { %3423 = vmatprep.mubr.f32.mxu0 %v4615_v14  ;;  %3870 = vmatprep.subr.bf16.mxu1 %v3869_v61  ;;  %v1951_v14 = vld [vmem:[#allocation5 + $0x170] sm:$0xff] }
 0x6ae   :  { %3424 = vmatmul.mubr.f32.gmra.mrb[70].mxu0 %v4618_v4  ;;  %3872 = vmatpush3.bf16.msra.mxu1 %v3869_v61  ;;  %v5156_v4 = vld [vmem:[#allocation15_spill] sm:$0xff] }
 0x6af   :  { %3426 = vmatprep.mubr.f32.mxu0 %v4621_v25  ;;  %3874 = vmatprep.subr.bf16.mxu1 %v3873_v16  ;;  %v3885_v25 = vpack.c.bf16 %v1952_v9, %v1951_v14  ;;  %v2137_v14 = vld [vmem:[#allocation7 + $0x170] sm:$0xff]  ;;  %v2138_v9 = vld [vmem:[#allocation7 + $0x178] sm:$0xff] }
 0x6b2   :  { %3427 = vmatmul.mubr.f32.gmra.mrb[72].mxu0 %v4624_v15  ;;  %3876 = vmatpush3.bf16.msra.mxu1 %v3873_v16  ;;  %v5159_v15 = vld [vmem:[#allocation18_spill] sm:$0xff] }
 0x6b3   :  { %3429 = vmatprep.mubr.f32.mxu0 %v4627_v56  ;;  %3878 = vmatprep.subr.bf16.mxu1 %v3877_v2  ;;  %v2123_v56 = vld [vmem:[#allocation7 + $0x100] sm:$0xff] }
 0x6b6   :  { %3430 = vmatmul.mubr.f32.gmra.mrb[74].mxu0 %v4630_v54  ;;  %3880 = vmatpush3.bf16.msra.mxu1 %v3877_v2  ;;  %v3889_v54 = vpack.c.bf16 %v2124_v47, %v2123_v56 }
 0x6b7   :  { %3432 = vmatprep.mubr.f32.mxu0 %v5156_v4  ;;  %3882 = vmatprep.subr.bf16.mxu1 %v3881_v60  ;;  %v3917_v4 = vpack.c.bf16 %v2138_v9, %v2137_v14 }
 0x6b8   :  { %3890 = vmatprep.subr.bf16.mxu0 %v3889_v54 }
 0x6b9   :  { %3892 = vmatpush3.bf16.msra.mxu0 %v3889_v54 }
 0x6ba   :  { %3433 = vmatmul.mubr.f32.gmra.mrb[76].mxu0 %v5157_v18  ;;  %3884 = vmatpush3.bf16.msra.mxu1 %v3881_v60  ;;  %v5160_v60 = vmov 0.0  }
 0x6bb   :  { %3435 = vmatprep.mubr.f32.mxu0 %v5158_v31  ;;  %3886 = vmatprep.subr.bf16.mxu1 %v3885_v25 }
 0x6bc   :  { %3894 = vmatprep.subr.bf16.mxu0 %v3893_v63 }
 0x6bd   :  { %3896 = vmatpush3.bf16.msra.mxu0 %v3893_v63 }
 0x6be   :  { %3436 = vmatmul.mubr.f32.gmra.mrb[78].mxu0 %v5159_v15  ;;  %3888 = vmatpush3.bf16.msra.mxu1 %v3885_v25  ;;  %v2630_v25 = vld [vmem:[%s5125_s5 + $0x2] ss:$0 sm:$0xff] }
 0x6bf   :  { %3921 = vmatprep.subr.bf16.mxu1 %v5155_v1  ;;  %3898 = vmatprep.subr.bf16.mxu0 %v3897_v35 }
 0x6c1   :  { %3900 = vmatpush3.bf16.msra.mxu0 %v3897_v35 }
 0x6c2   :  { %3902 = vmatprep.subr.bf16.mxu0 %v3901_v22 }
 0x6c5   :  { %3904 = vmatpush3.bf16.msra.mxu0 %v3901_v22 }
 0x6c6   :  { %3906 = vmatprep.subr.bf16.mxu0 %v3905_v12 }
 0x6c9   :  { %3908 = vmatpush3.bf16.msra.mxu0 %v3905_v12 }
 0x6ca   :  { %3910 = vmatprep.subr.bf16.mxu0 %v3909_v27 }
 0x6cd   :  { %3912 = vmatpush3.bf16.msra.mxu0 %v3909_v27 }
 0x6ce   :  { %3914 = vmatprep.subr.bf16.mxu0 %v3913_v11 }
 0x6d1   :  { %3916 = vmatpush3.bf16.msra.mxu0 %v3913_v11 }
 0x6d2   :  { %3918 = vmatprep.subr.bf16.mxu0 %v3917_v4 }
 0x6d5   :  { %3920 = vmatpush3.bf16.msra.mxu0 %v3917_v4 }
 0x774   :  { %v1786_v7 = vpop.f32.mrb[34].mxu1 }
 0x775   :  { %v3416_v58 = vpop.f32.mrb[64].mxu0  ;;  %1790 = vst [vmem:[#allocation9 + $0x8] sm:$0xff] %v1786_v7  ;;  %v3381_v28 = vpop.f32.mrb[35].mxu1 }
 0x776   :  { %v1857_v62 = vpop.f32.mrb[65].mxu0 }
 0x777   :  { %3470 = vmatprep.mubr.f32.mxu1 %v1857_v62 }
 0x778   :  { %3471 = vmatmul.mubr.f32.vlgmr.msra.gmra.mrb[36].mxu1 %v3416_v58 }
 0x779   :  { %v3419_v6 = vpop.f32.mrb[66].mxu0 }
 0x77a   :  { %v1867_v5 = vpop.f32.mrb[67].mxu0 }
 0x77b   :  { %3473 = vmatprep.mubr.f32.mxu1 %v1867_v5 }
 0x77c   :  { %3474 = vmatmul.mubr.f32.gmra.mrb[38].mxu1 %v3419_v6 }
 0x77d   :  { %v3422_v55 = vpop.f32.mrb[68].mxu0 }
 0x77e   :  { %v1877_v42 = vpop.f32.mrb[69].mxu0 }
 0x77f   :  { %3476 = vmatprep.mubr.f32.mxu1 %v1877_v42 }
 0x780   :  { %3477 = vmatmul.mubr.f32.gmra.mrb[40].mxu1 %v3422_v55 }
 0x781   :  { %v3425_v33 = vpop.f32.mrb[70].mxu0 }
 0x782   :  { %v1887_v61 = vpop.f32.mrb[71].mxu0 }
 0x783   :  { %3479 = vmatprep.mubr.f32.mxu1 %v1887_v61 }
 0x784   :  { %3480 = vmatmul.mubr.f32.gmra.mrb[42].mxu1 %v3425_v33 }
 0x785   :  { %v3428_v51 = vpop.f32.mrb[72].mxu0 }
 0x786   :  { %v1897_v23 = vpop.f32.mrb[73].mxu0 }
 0x787   :  { %3482 = vmatprep.mubr.f32.mxu1 %v1897_v23 }
 0x788   :  { %3483 = vmatmul.mubr.f32.gmra.mrb[44].mxu1 %v3428_v51 }
 0x789   :  { %v3431_v16 = vpop.f32.mrb[74].mxu0 }
 0x78a   :  { %v1907_v0 = vpop.f32.mrb[75].mxu0 }
 0x78b   :  { %3485 = vmatprep.mubr.f32.mxu1 %v1907_v0 }
 0x78c   :  { %3486 = vmatmul.mubr.f32.gmra.mrb[46].mxu1 %v3431_v16 }
 0x78d   :  { %v3434_v41 = vpop.f32.mrb[76].mxu0 }
 0x78e   :  { %v1917_v2 = vpop.f32.mrb[77].mxu0 }
 0x78f   :  { %3488 = vmatprep.mubr.f32.mxu1 %v1917_v2 }
 0x790   :  { %3489 = vmatmul.mubr.f32.gmra.mrb[48].mxu1 %v3434_v41 }
 0x791   :  { %v3437_v38 = vpop.f32.mrb[78].mxu0 }
 0x792   :  { %v1927_v30 = vpop.f32.mrb[79].mxu0 }
 0x793   :  { %3491 = vmatprep.mubr.f32.mxu1 %v1927_v30 }
 0x794   :  { %3492 = vmatmul.mubr.f32.gmra.mrb[50].mxu1 %v3437_v38 }
 0x795   :  { %3582 = vmatprep.mubr.msk.f32.mxu1 %vm4108_vm0, %v5160_v60 }
 0x84b   :  { %v3472_v18 = vpop.f32.mrb[36].mxu1 }
 0x84c   :  { %v2033_v31 = vadd.f32 %v3472_v18, %v2630_v25  ;;  %v2027_v15 = vpop.f32.mrb[37].mxu1 }
 0x84d   :  { %v2028_v56 = vadd.f32 %v2630_v25, %v2027_v15  ;;  %v4895_v15 = vld [vmem:[%s5127_s7 + $0x2] ss:$0 sm:$0xff] }
 0x84e   :  { %v2107_v54 = vmax.f32 %v2033_v31, 0.0 }
 0x84f   :  { %v2106_v47 = vmax.f32 %v2028_v56, 0.0  ;;  %v3475_v59 = vpop.f32.mrb[38].mxu1 }
 0x850   :  { %v2043_v52 = vadd.f32 %v3475_v59, %v2630_v25  ;;  %v2037_v63 = vpop.f32.mrb[39].mxu1 }
 0x851   :  { %v2038_v17 = vadd.f32 %v2630_v25, %v2037_v63  ;;  %3526 = vmatprep.mubr.f32.mxu0 %v2106_v47 }
 0x852   :  { %3527 = vmatmul.mubr.f32.vlgmr.msra.gmra.mrb[80].mxu0 %v2107_v54  ;;  %v2109_v48 = vmax.f32 %v2043_v52, 0.0 }
 0x853   :  { %v2108_v19 = vmax.f32 %v2038_v17, 0.0  ;;  %v3478_v35 = vpop.f32.mrb[40].mxu1 }
 0x854   :  { %v2053_v39 = vadd.f32 %v3478_v35, %v2630_v25  ;;  %v2047_v22 = vpop.f32.mrb[41].mxu1 }
 0x855   :  { %v2048_v34 = vadd.f32 %v2630_v25, %v2047_v22  ;;  %3529 = vmatprep.mubr.f32.mxu0 %v2108_v19 }
 0x856   :  { %3530 = vmatmul.mubr.f32.gmra.mrb[82].mxu0 %v2109_v48  ;;  %v2111_v32 = vmax.f32 %v2053_v39, 0.0 }
 0x857   :  { %v2110_v50 = vmax.f32 %v2048_v34, 0.0  ;;  %v3481_v12 = vpop.f32.mrb[42].mxu1 }
 0x858   :  { %v2063_v29 = vadd.f32 %v3481_v12, %v2630_v25  ;;  %v2057_v27 = vpop.f32.mrb[43].mxu1 }
 0x859   :  { %v2058_v13 = vadd.f32 %v2630_v25, %v2057_v27  ;;  %3532 = vmatprep.mubr.f32.mxu0 %v2110_v50 }
 0x85a   :  { %3533 = vmatmul.mubr.f32.gmra.mrb[84].mxu0 %v2111_v32  ;;  %v2113_v7 = vmax.f32 %v2063_v29, 0.0 }
 0x85b   :  { %v2112_v24 = vmax.f32 %v2058_v13, 0.0  ;;  %v3484_v11 = vpop.f32.mrb[44].mxu1 }
 0x85c   :  { %v2073_v58 = vadd.f32 %v3484_v11, %v2630_v25  ;;  %v2067_v28 = vpop.f32.mrb[45].mxu1 }
 0x85d   :  { %v2068_v62 = vadd.f32 %v2630_v25, %v2067_v28  ;;  %3535 = vmatprep.mubr.f32.mxu0 %v2112_v24 }
 0x85e   :  { %3536 = vmatmul.mubr.f32.gmra.mrb[86].mxu0 %v2113_v7  ;;  %v2115_v55 = vmax.f32 %v2073_v58, 0.0 }
 0x85f   :  { %v2114_v6 = vmax.f32 %v2068_v62, 0.0  ;;  %v3487_v5 = vpop.f32.mrb[46].mxu1 }
 0x860   :  { %v2083_v42 = vadd.f32 %v3487_v5, %v2630_v25  ;;  %v2077_v33 = vpop.f32.mrb[47].mxu1 }
 0x861   :  { %v2078_v61 = vadd.f32 %v2630_v25, %v2077_v33  ;;  %3538 = vmatprep.mubr.f32.mxu0 %v2114_v6 }
 0x862   :  { %3539 = vmatmul.mubr.f32.gmra.mrb[88].mxu0 %v2115_v55  ;;  %v2117_v16 = vmax.f32 %v2083_v42, 0.0 }
 0x863   :  { %v2116_v51 = vmax.f32 %v2078_v61, 0.0  ;;  %v3490_v23 = vpop.f32.mrb[48].mxu1 }
 0x864   :  { %v2093_v0 = vadd.f32 %v3490_v23, %v2630_v25  ;;  %v2087_v41 = vpop.f32.mrb[49].mxu1 }
 0x865   :  { %v2088_v2 = vadd.f32 %v2630_v25, %v2087_v41  ;;  %3541 = vmatprep.mubr.f32.mxu0 %v2116_v51 }
 0x866   :  { %3542 = vmatmul.mubr.f32.gmra.mrb[90].mxu0 %v2117_v16  ;;  %v2119_v60 = vmax.f32 %v2093_v0, 0.0 }
 0x867   :  { %v2118_v38 = vmax.f32 %v2088_v2, 0.0  ;;  %v3493_v30 = vpop.f32.mrb[50].mxu1 }
 0x868   :  { %v2103_v14 = vadd.f32 %v3493_v30, %v2630_v25  ;;  %v2097_v9 = vpop.f32.mrb[51].mxu1 }
 0x869   :  { %v2098_v4 = vadd.f32 %v2630_v25, %v2097_v9  ;;  %3544 = vmatprep.mubr.f32.mxu0 %v2118_v38 }
 0x86a   :  { %3545 = vmatmul.mubr.f32.gmra.mrb[92].mxu0 %v2119_v60  ;;  %v2121_v31 = vmax.f32 %v2103_v14, 0.0 }
 0x86b   :  { %v2120_v18 = vmax.f32 %v2098_v4, 0.0 }
 0x86d   :  { %3547 = vmatprep.mubr.f32.mxu0 %v2120_v18 }
 0x86e   :  { %3548 = vmatmul.mubr.f32.gmra.mrb[94].mxu0 %v2121_v31 }
 0x925   :  { %v3528_v56 = vpop.f32.mrb[80].mxu0 }
 0x926   :  { %v4898_v47 = vadd.f32 %v3528_v56, %v4895_v15  ;;  %v2213_v59 = vpop.f32.mrb[81].mxu0 }
 0x927   :  { %v4901_v54 = vadd.f32 %v4895_v15, %v2213_v59 }
 0x928   :  { %v2293_v25 = vmax.f32 %v4898_v47, 0.0 }
 0x929   :  { %v2292_v52 = vmax.f32 %v4901_v54, 0.0  ;;  %v3531_v63 = vpop.f32.mrb[82].mxu0 }
 0x92a   :  { %v2309_v17 = vmul.f32 %v2293_v25, %v4333_v46  ;;  %v4909_v19 = vadd.f32 %v3531_v63, %v4895_v15  ;;  %v2223_v35 = vpop.f32.mrb[83].mxu0 }
 0x92b   :  { %v2308_v48 = vmul.f32 %v2292_v52, %v4329_v44  ;;  %v4915_v39 = vadd.f32 %v4895_v15, %v2223_v35 }
 0x92c   :  { %v2295_v34 = vmax.f32 %v4909_v19, 0.0 }
 0x92d   :  { %v2324_v22 = vadd.f32 %v2309_v17, %v2308_v48  ;;  %v2294_v50 = vmax.f32 %v4915_v39, 0.0  ;;  %v3534_v12 = vpop.f32.mrb[84].mxu0 }
 0x92e   :  { %v4920_v32 = vadd.f32 %v3534_v12, %v4895_v15  ;;  %v2233_v29 = vpop.f32.mrb[85].mxu0  ;;  %v2311_v24 = vmul.f32 %v2295_v34, %v4341_v49 }
 0x92f   :  { %v2310_v27 = vmul.f32 %v2294_v50, %v4331_v45  ;;  %v4926_v13 = vadd.f32 %v4895_v15, %v2233_v29 }
 0x930   :  { %v2297_v7 = vmax.f32 %v4920_v32, 0.0 }
 0x931   :  { %v2325_v11 = vadd.f32 %v2324_v22, %v2310_v27  ;;  %v2296_v58 = vmax.f32 %v4926_v13, 0.0  ;;  %v3537_v28 = vpop.f32.mrb[86].mxu0 }
 0x932   :  { %v4934_v62 = vadd.f32 %v3537_v28, %v4895_v15  ;;  %v2243_v6 = vpop.f32.mrb[87].mxu0  ;;  %v2313_v33 = vmul.f32 %v2297_v7, %v4353_v57 }
 0x933   :  { %v2312_v5 = vmul.f32 %v2296_v58, %v4349_v53  ;;  %v2326_v55 = vadd.f32 %v2325_v11, %v2311_v24  ;;  %v4940_v42 = vadd.f32 %v4895_v15, %v2243_v6 }
 0x934   :  { %v2299_v51 = vmax.f32 %v4934_v62, 0.0 }
 0x935   :  { %v2327_v61 = vadd.f32 %v2326_v55, %v2312_v5  ;;  %v2298_v23 = vmax.f32 %v4940_v42, 0.0  ;;  %v3540_v16 = vpop.f32.mrb[88].mxu0 }
 0x936   :  { %v2259_v0 = vadd.f32 %v3540_v16, %v4895_v15  ;;  %v2253_v41 = vpop.f32.mrb[89].mxu0  ;;  %v2315_v60 = vmul.f32 %v2299_v51, %v4380_v8 }
 0x937   :  { %v2314_v2 = vmul.f32 %v2298_v23, %v4369_v3  ;;  %v2328_v38 = vadd.f32 %v2327_v61, %v2313_v33  ;;  %v2254_v30 = vadd.f32 %v4895_v15, %v2253_v41 }
 0x938   :  { %v2301_v9 = vmax.f32 %v2259_v0, 0.0 }
 0x939   :  { %v2329_v14 = vadd.f32 %v2328_v38, %v2314_v2  ;;  %v2300_v4 = vmax.f32 %v2254_v30, 0.0  ;;  %v3543_v18 = vpop.f32.mrb[90].mxu0 }
 0x93a   :  { %v2269_v31 = vadd.f32 %v3543_v18, %v4895_v15  ;;  %v2263_v56 = vpop.f32.mrb[91].mxu0  ;;  %v2317_v35 = vmul.f32 %v2301_v9, %v4403_v26 }
 0x93b   :  { %v2316_v59 = vmul.f32 %v2300_v4, %v4396_v20  ;;  %v2330_v63 = vadd.f32 %v2329_v14, %v2315_v60  ;;  %v2264_v17 = vadd.f32 %v4895_v15, %v2263_v56 }
 0x93c   :  { %v2303_v22 = vmax.f32 %v2269_v31, 0.0 }
 0x93d   :  { %v2331_v48 = vadd.f32 %v2330_v63, %v2316_v59  ;;  %v2302_v12 = vmax.f32 %v2264_v17, 0.0  ;;  %v3546_v29 = vpop.f32.mrb[92].mxu0 }
 0x93e   :  { %v2279_v27 = vadd.f32 %v3546_v29, %v4895_v15  ;;  %v2273_v24 = vpop.f32.mrb[93].mxu0  ;;  %v2319_v6 = vmul.f32 %v2303_v22, %v4421_v43 }
 0x93f   :  { %v2318_v11 = vmul.f32 %v2302_v12, %v4416_v37  ;;  %v2332_v28 = vadd.f32 %v2331_v48, %v2317_v35  ;;  %v2274_v62 = vadd.f32 %v4895_v15, %v2273_v24 }
 0x940   :  { %v2305_v55 = vmax.f32 %v2279_v27, 0.0 }
 0x941   :  { %v2333_v5 = vadd.f32 %v2332_v28, %v2318_v11  ;;  %v2304_v42 = vmax.f32 %v2274_v62, 0.0  ;;  %v3549_v33 = vpop.f32.mrb[94].mxu0 }
 0x942   :  { %v2289_v61 = vadd.f32 %v3549_v33, %v4895_v15  ;;  %v2283_v16 = vpop.f32.mrb[95].mxu0  ;;  %v2321_v38 = vmul.f32 %v2305_v55, %v4430_v21 }
 0x943   :  { %v2320_v0 = vmul.f32 %v2304_v42, %v4427_v10  ;;  %v2334_v41 = vadd.f32 %v2333_v5, %v2319_v6  ;;  %v2284_v2 = vadd.f32 %v4895_v15, %v2283_v16 }
 0x944   :  { %v2307_v60 = vmax.f32 %v2289_v61, 0.0 }
 0x945   :  { %v2335_v30 = vadd.f32 %v2334_v41, %v2320_v0  ;;  %v2306_v14 = vmax.f32 %v2284_v2, 0.0 }
 0x946   :  { %v2323_v56 = vmul.f32 %v2307_v60, %v4439_v40 }
 0x947   :  { %v2322_v18 = vmul.f32 %v2306_v14, %v4436_v36  ;;  %v2336_v31 = vadd.f32 %v2335_v30, %v2321_v38 }
 0x949   :  { %v2337_v59 = vadd.f32 %v2336_v31, %v2322_v18 }
 0x94b   :  { %v2338_v63 = vadd.f32 %v2337_v59, %v2323_v56 }
 0x94d   :  { %v2339_v17 = vrot.slane %v2338_v63, 4 }
 0x94f   :  { %v2340_v35 = vadd.f32 %v2339_v17, %v2338_v63 }
 0x951   :  { %v2341_v48 = vrot.slane %v2340_v35, 2 }
 0x953   :  { %v2342_v29 = vadd.f32 %v2341_v48, %v2340_v35 }
 0x955   :  { %v2343_v27 = vrot.slane %v2342_v29, 1 }
 0x957   :  { %v2344_v24 = vadd.f32 %v2343_v27, %v2342_v29 }
 0x959   :  { %v2345_v11 = vmul.f32 0.0625, %v2344_v24 }
 0x95b   :  { %v2346_v15 = vsub.f32 %v2292_v52, %v2345_v11  ;;  %v2347_v28 = vsub.f32 %v2293_v25, %v2345_v11  ;;  %v2348_v62 = vsub.f32 %v2294_v50, %v2345_v11  ;;  %v2349_v6 = vsub.f32 %v2295_v34, %v2345_v11 }
 0x95c   :  { %v2350_v5 = vsub.f32 %v2296_v58, %v2345_v11  ;;  %v2351_v33 = vsub.f32 %v2297_v7, %v2345_v11  ;;  %v2352_v61 = vsub.f32 %v2298_v23, %v2345_v11  ;;  %v2353_v16 = vsub.f32 %v2299_v51, %v2345_v11 }
 0x95d   :  { %v2354_v0 = vsub.f32 %v2300_v4, %v2345_v11  ;;  %v2355_v54 = vsub.f32 %v2301_v9, %v2345_v11  ;;  %v2356_v52 = vsub.f32 %v2302_v12, %v2345_v11  ;;  %v2357_v41 = vsub.f32 %v2303_v22, %v2345_v11 }
 0x95e   :  { %v2358_v47 = vsub.f32 %v2304_v42, %v2345_v11  ;;  %v2359_v25 = vsub.f32 %v2305_v55, %v2345_v11  ;;  %v2360_v2 = vsub.f32 %v2306_v14, %v2345_v11  ;;  %v2361_v39 = vsub.f32 %v2307_v60, %v2345_v11 }
 0x95f   :  { %v2362_v50 = vmul.f32 %v2346_v15, %v4329_v44  ;;  %v2363_v19 = vmul.f32 %v2347_v28, %v4333_v46  ;;  %v2364_v34 = vmul.f32 %v2348_v62, %v4331_v45  ;;  %v2365_v32 = vmul.f32 %v2349_v6, %v4341_v49 }
 0x960   :  { %v2366_v7 = vmul.f32 %v2350_v5, %v4349_v53  ;;  %v2367_v9 = vmul.f32 %v2351_v33, %v4353_v57  ;;  %v2368_v12 = vmul.f32 %v2352_v61, %v4369_v3  ;;  %v2369_v38 = vmul.f32 %v2353_v16, %v4380_v8 }
 0x961   :  { %v2378_v13 = vmul.f32 %v2362_v50, %v2362_v50  ;;  %v2379_v58 = vmul.f32 %v2363_v19, %v2363_v19  ;;  %v2380_v51 = vmul.f32 %v2364_v34, %v2364_v34  ;;  %v2381_v4 = vmul.f32 %v2365_v32, %v2365_v32 }
 0x962   :  { %v2382_v55 = vmul.f32 %v2366_v7, %v2366_v7  ;;  %v2383_v30 = vmul.f32 %v2367_v9, %v2367_v9  ;;  %v4986_v14 = vmul.f32 %v2354_v0, %v4396_v20  ;;  %v2384_v18 = vmul.f32 %v2368_v12, %v2368_v12 }
 0x963   :  { %v2394_v23 = vadd.f32 %v2379_v58, %v2378_v13  ;;  %v4989_v56 = vmul.f32 %v2355_v54, %v4403_v26  ;;  %v2385_v59 = vmul.f32 %v2369_v38, %v2369_v38  ;;  %v4992_v17 = vmul.f32 %v2356_v52, %v4416_v37 }
 0x964   :  { %v2386_v35 = vmul.f32 %v4986_v14, %v4986_v14  ;;  %v4997_v29 = vmul.f32 %v2357_v41, %v4421_v43  ;;  %v5002_v11 = vmul.f32 %v2358_v47, %v4427_v10  ;;  %v5007_v62 = vmul.f32 %v2359_v25, %v4430_v21 }
 0x965   :  { %v2395_v22 = vadd.f32 %v2394_v23, %v2380_v51  ;;  %v2387_v27 = vmul.f32 %v4989_v56, %v4989_v56  ;;  %v2388_v15 = vmul.f32 %v4992_v17, %v4992_v17  ;;  %v2376_v33 = vmul.f32 %v2360_v2, %v4436_v36 }
 0x966   :  { %v2389_v6 = vmul.f32 %v4997_v29, %v4997_v29  ;;  %v2390_v61 = vmul.f32 %v5002_v11, %v5002_v11  ;;  %v5015_v0 = vmul.f32 %v2361_v39, %v4439_v40  ;;  %v2391_v54 = vmul.f32 %v5007_v62, %v5007_v62 }
 0x967   :  { %v2396_v42 = vadd.f32 %v2395_v22, %v2381_v4  ;;  %v2392_v41 = vmul.f32 %v2376_v33, %v2376_v33 }
 0x968   :  { %v2393_v25 = vmul.f32 %v5015_v0, %v5015_v0 }
 0x969   :  { %v2397_v60 = vadd.f32 %v2396_v42, %v2382_v55 }
 0x96b   :  { %v2398_v31 = vadd.f32 %v2397_v60, %v2383_v30  ;;  %v5024_v60 = vld [vmem:[%s5128_s8 + $0x2] ss:$0 sm:$0xff] }
 0x96d   :  { %v2399_v63 = vadd.f32 %v2398_v31, %v2384_v18 }
 0x96f   :  { %v2400_v48 = vadd.f32 %v2399_v63, %v2385_v59 }
 0x971   :  { %v2401_v24 = vadd.f32 %v2400_v48, %v2386_v35  ;;  %v5029_v35 = vld [vmem:[%s5129_s9 + $0x2] ss:$0 sm:$0xff] }
 0x973   :  { %v2402_v28 = vadd.f32 %v2401_v24, %v2387_v27 }
 0x975   :  { %v2403_v5 = vadd.f32 %v2402_v28, %v2388_v15 }
 0x977   :  { %v2404_v16 = vadd.f32 %v2403_v5, %v2389_v6 }
 0x979   :  { %v2405_v52 = vadd.f32 %v2404_v16, %v2390_v61 }
 0x97b   :  { %v2406_v47 = vadd.f32 %v2405_v52, %v2391_v54 }
 0x97d   :  { %v2407_v13 = vadd.f32 %v2406_v47, %v2392_v41 }
 0x97f   :  { %v2408_v58 = vadd.f32 %v2407_v13, %v2393_v25 }
 0x981   :  { %v2409_v51 = vrot.slane %v2408_v58, 4 }
 0x983   :  { %v2410_v2 = vadd.f32 %v2409_v51, %v2408_v58 }
 0x985   :  { %v2411_v23 = vrot.slane %v2410_v2, 2 }
 0x987   :  { %v2412_v4 = vadd.f32 %v2411_v23, %v2410_v2 }
 0x989   :  { %v2413_v22 = vrot.slane %v2412_v4, 1 }
 0x98b   :  { %v2414_v55 = vadd.f32 %v2413_v22, %v2412_v4 }
 0x98d   :  { %v2415_v42 = vmul.f32 0.0625, %v2414_v55 }
 0x98f   :  { %v2416_v39 = vadd.f32 1e-05, %v2415_v42 }
 0x991   :  { %3964 = vrsqrt.f32 %v2416_v39 }
 0x99b   :  { %v3965_v30 = vpop.eup %3964 }
 0x99c   :  { %v2432_v18 = vmul.f32 %v3965_v30, %v2376_v33  ;;  %v2418_v31 = vmul.f32 %v3965_v30, %v2362_v50  ;;  %v2419_v59 = vmul.f32 %v3965_v30, %v2363_v19  ;;  %v2420_v63 = vmul.f32 %v3965_v30, %v2364_v34 }
 0x99d   :  { %v2421_v48 = vmul.f32 %v3965_v30, %v2365_v32  ;;  %v2422_v27 = vmul.f32 %v3965_v30, %v2366_v7  ;;  %v2423_v24 = vmul.f32 %v3965_v30, %v2367_v9  ;;  %v2424_v15 = vmul.f32 %v3965_v30, %v2368_v12 }
 0x99e   :  { %v2456_v28 = vmul.f32 %v5024_v60, %v2432_v18  ;;  %v2442_v6 = vmul.f32 %v5024_v60, %v2418_v31  ;;  %v2443_v5 = vmul.f32 %v5024_v60, %v2419_v59  ;;  %v2444_v33 = vmul.f32 %v5024_v60, %v2420_v63 }
 0x99f   :  { %v2445_v50 = vmul.f32 %v5024_v60, %v2421_v48  ;;  %v2446_v19 = vmul.f32 %v5024_v60, %v2422_v27  ;;  %v2447_v34 = vmul.f32 %v5024_v60, %v2423_v24  ;;  %v2425_v61 = vmul.f32 %v3965_v30, %v2369_v38 }
 0x9a0   :  { %v2480_v32 = vadd.f32 %v5029_v35, %v2456_v28  ;;  %v2466_v7 = vadd.f32 %v5029_v35, %v2442_v6  ;;  %v2467_v9 = vadd.f32 %v5029_v35, %v2443_v5  ;;  %v2468_v12 = vadd.f32 %v5029_v35, %v2444_v33 }
 0x9a1   :  { %v2469_v16 = vadd.f32 %v5029_v35, %v2445_v50  ;;  %v2470_v54 = vadd.f32 %v5029_v35, %v2446_v19  ;;  %v2471_v52 = vadd.f32 %v5029_v35, %v2447_v34  ;;  %v2448_v41 = vmul.f32 %v5024_v60, %v2424_v15 }
 0x9a2   :  { %v2482_v47 = vmul.f32 %v2466_v7, %v4329_v44  ;;  %v2483_v38 = vmul.f32 %v2467_v9, %v4333_v46  ;;  %v2484_v25 = vmul.f32 %v2468_v12, %v4331_v45  ;;  %v2449_v13 = vmul.f32 %v5024_v60, %v2425_v61 }
 0x9a3   :  { %v2485_v58 = vmul.f32 %v2469_v16, %v4341_v49  ;;  %v2486_v51 = vmul.f32 %v2470_v54, %v4349_v53  ;;  %v2487_v2 = vmul.f32 %v2471_v52, %v4353_v57  ;;  %v2472_v23 = vadd.f32 %v5029_v35, %v2448_v41 }
 0x9a4   :  { %2498 = vst [vmem:[#allocation8 + $0x10] sm:$0xff] %v2482_v47  ;;  %2499 = vst [vmem:[#allocation8 + $0x28] sm:$0xff] %v2483_v38  ;;  %v3922_v4 = vpack.c.bf16 %v2483_v38, %v2482_v47  ;;  %v2473_v44 = vadd.f32 %v5029_v35, %v2449_v13  ;;  %v2426_v46 = vmul.f32 %v3965_v30, %v4986_v14 }
 0x9a5   :  { %2500 = vst [vmem:[#allocation8 + $0x40] sm:$0xff] %v2484_v25  ;;  %v2427_v45 = vmul.f32 %v3965_v30, %v4989_v56  ;;  %2501 = vst [vmem:[#allocation8 + $0x58] sm:$0xff] %v2485_v58  ;;  %v3925_v22 = vpack.c.bf16 %v2485_v58, %v2484_v25  ;;  %v3928_v49 = vpack.c.bf16 %v2487_v2, %v2486_v51 }
 0x9a6   :  { %2502 = vst [vmem:[#allocation8 + $0x70] sm:$0xff] %v2486_v51  ;;  %2503 = vst [vmem:[#allocation8 + $0x88] sm:$0xff] %v2487_v2  ;;  %v2488_v53 = vmul.f32 %v2472_v23, %v4369_v3  ;;  %v2428_v57 = vmul.f32 %v3965_v30, %v4992_v17  ;;  %3923 = vmatpush3.bf16.msra.mxu1 %v3922_v4  ;;  %v2489_v55 = vmul.f32 %v2473_v44, %v4380_v8 }
 0x9a7   :  { %v2450_v42 = vmul.f32 %v5024_v60, %v2426_v46  ;;  %v2451_v39 = vmul.f32 %v5024_v60, %v2427_v45  ;;  %v2429_v14 = vmul.f32 %v3965_v30, %v4997_v29  ;;  %3924 = vmatprep.subr.bf16.mxu1 %v5155_v1  ;;  %v2430_v18 = vmul.f32 %v3965_v30, %v5002_v11 }
 0x9a8   :  { %2504 = vst [vmem:[#allocation8 + $0xa0] sm:$0xff] %v2488_v53  ;;  %v2452_v56 = vmul.f32 %v5024_v60, %v2428_v57  ;;  %v2431_v3 = vmul.f32 %v3965_v30, %v5007_v62  ;;  %v2433_v17 = vmul.f32 %v3965_v30, %v5015_v0  ;;  %2505 = vst [vmem:[#allocation8 + $0xb8] sm:$0xff] %v2489_v55 }
 0x9a9   :  { %v3931_v31 = vpack.c.bf16 %v2489_v55, %v2488_v53  ;;  %v2474_v8 = vadd.f32 %v5029_v35, %v2450_v42  ;;  %v2475_v59 = vadd.f32 %v5029_v35, %v2451_v39  ;;  %v2453_v63 = vmul.f32 %v5024_v60, %v2429_v14 }
 0x9aa   :  { %v2476_v29 = vadd.f32 %v5029_v35, %v2452_v56  ;;  %v2454_v48 = vmul.f32 %v5024_v60, %v2430_v18  ;;  %v2455_v27 = vmul.f32 %v5024_v60, %v2431_v3  ;;  %v2457_v11 = vmul.f32 %v5024_v60, %v2433_v17  ;;  %3926 = vmatpush3.bf16.msra.mxu1 %v3925_v22 }
 0x9ab   :  { %v2490_v62 = vmul.f32 %v2474_v8, %v4396_v20  ;;  %v2491_v0 = vmul.f32 %v2475_v59, %v4403_v26  ;;  %v2477_v30 = vadd.f32 %v5029_v35, %v2453_v63  ;;  %v2496_v24 = vmul.f32 %v2480_v32, %v4436_v36  ;;  %3927 = vmatprep.subr.bf16.mxu1 %v5155_v1 }
 0x9ac   :  { %v2492_v15 = vmul.f32 %v2476_v29, %v4416_v37  ;;  %v2478_v28 = vadd.f32 %v5029_v35, %v2454_v48  ;;  %v2479_v6 = vadd.f32 %v5029_v35, %v2455_v27  ;;  %v2481_v5 = vadd.f32 %v5029_v35, %v2457_v11 }
 0x9ad   :  { %2506 = vst [vmem:[#allocation8 + $0xd0] sm:$0xff] %v2490_v62  ;;  %2507 = vst [vmem:[#allocation8 + $0xe8] sm:$0xff] %v2491_v0  ;;  %v3934_v60 = vpack.c.bf16 %v2491_v0, %v2490_v62  ;;  %v2493_v20 = vmul.f32 %v2477_v30, %v4421_v43  ;;  %v3982_v43 = vld [vmem:[%s5123_s3] sm:$0xff] }
 0x9ae   :  { %2512 = vst [vmem:[#allocation8 + $0x160] sm:$0xff] %v2496_v24  ;;  %2508 = vst [vmem:[#allocation8 + $0x100] sm:$0xff] %v2492_v15  ;;  %v2494_v26 = vmul.f32 %v2478_v28, %v4427_v10  ;;  %v2495_v36 = vmul.f32 %v2479_v6, %v4430_v21  ;;  %v2497_v33 = vmul.f32 %v2481_v5, %v4439_v40  ;;  %3929 = vmatpush3.bf16.msra.mxu1 %v3928_v49 }
 0x9af   :  { %2509 = vst [vmem:[#allocation8 + $0x118] sm:$0xff] %v2493_v20  ;;  %v3937_v37 = vpack.c.bf16 %v2493_v20, %v2492_v15  ;;  %3930 = vmatprep.subr.bf16.mxu1 %v5155_v1 }
 0x9b0   :  { %2510 = vst [vmem:[#allocation8 + $0x130] sm:$0xff] %v2494_v26  ;;  %2511 = vst [vmem:[#allocation8 + $0x148] sm:$0xff] %v2495_v36  ;;  %v3940_v35 = vpack.c.bf16 %v2495_v36, %v2494_v26  ;;  %v3943_v50 = vpack.c.bf16 %v2497_v33, %v2496_v24 }
 0x9b1   :  { %2513 = vst [vmem:[#allocation8 + $0x178] sm:$0xff] %v2497_v33 }
 0x9b2   :  { %3932 = vmatpush3.bf16.msra.mxu1 %v3931_v31 }
 0x9b3   :  { %3933 = vmatprep.subr.bf16.mxu1 %v5155_v1 }
 0x9b6   :  { %3935 = vmatpush3.bf16.msra.mxu1 %v3934_v60 }
 0x9b7   :  { %3936 = vmatprep.subr.bf16.mxu1 %v5155_v1 }
 0x9ba   :  { %3938 = vmatpush3.bf16.msra.mxu1 %v3937_v37 }
 0x9bb   :  { %3939 = vmatprep.subr.bf16.mxu1 %v5155_v1 }
 0x9be   :  { %3941 = vmatpush3.bf16.msra.mxu1 %v3940_v35 }
 0x9bf   :  { %3942 = vmatprep.subr.bf16.mxu1 %v5155_v1 }
 0x9c2   :  { %3944 = vmatpush3.bf16.msra.mxu1 %v3943_v50 }
 0x9c5   :  { %3583 = vmatmul.mubr.f32.vlgmr.msra.gmra.mrb[52].mxu1 %v3982_v43 }
 0x9c6   :  { %4060 = shalt.err (!%p4057_p0)
}
 0x9c7   :  { %s4061_s17 = scalar_lea.hbm %s5130_s10, 6144 }
 0x9c8   :  { %p4062_p1 = scmp.ne.s32.totalorder %s5130_s10, %s4061_s17  ;;  %p4065_p2 = scmp.lt.u32.totalorder %s4061_s17, %s5130_s10 }
 0x9ca   :  { %p4067_p3 = pnand %p4065_p2, %p4062_p1 }
 0x9cc   :  { %4070 = shalt.err (!%p4067_p3)
}
 0x9cd   :  { %s4111_s23 = smov 384   ;;  %s4112_s4 = smov 24  }
 0x9ce   :  { %2596 = dma.vmem_to_hbm [thread:$0]  %s2591_s16, 6144, %s5130_s10, [#allocation4], %s4111_s23, %s4111_s23, %s4112_s4  }
 0x9cf   :  { %s4113_s6 = smov [#allocation9]  }
 0x9d0   :  { %s2603_s29 = sshll.u32 %s4113_s6, 4  ;;  %s2604_s29 = int_to_ptr.vmem [resolvable:$true] %s2603_s29 }
 0x9d1   :  { %s4071_s0 = scalar_lea.vmem %s2604_s29, 384  ;;  %p4076_p5 = scmp.lt.s32.totalorder %s2604_s29, %s2604_s29 }
 0x9d2   :  { %p4072_p4 = scmp.ne.s32.totalorder %s2604_s29, %s4071_s0  ;;  %p4077_p6 = scmp.lt.s32.totalorder %s4071_s0, %s4071_s0 }
 0x9d4   :  { %p4078_p7 = por %p4077_p6, %p4076_p5 }
 0x9d6   :  { %p4079_p8 = pnand %p4078_p7, %p4072_p4 }
 0xa98   :  { %v2580_v10 = vpop.f32.mrb[52].mxu1 }
 0xa99   :  { %2584 = vst [vmem:[#allocation9 + $0x10] sm:$0xff] %v2580_v10  ;;  %v3584_v21 = vpop.f32.mrb[53].mxu1 }
 0xa9a   :  { %4082 = shalt.err (!%p4079_p8)
}
 0xa9b   :  { %s4083_s26 = scalar_lea.hbm %s5131_s11, 384 }
 0xa9c   :  { %p4084_p9 = scmp.ne.s32.totalorder %s5131_s11, %s4083_s26  ;;  %p4087_p10 = scmp.lt.u32.totalorder %s4083_s26, %s5131_s11 }
 0xa9e   :  { %p4089_p11 = pnand %p4087_p10, %p4084_p9 }
 0xaa0   :  { %4092 = shalt.err (!%p4089_p11)
}
 0xaa1   :  { %2606 = dma.vmem_to_hbm [thread:$0]  %s2604_s29, 384, %s5131_s11, [#allocation10]  }
 0xaa2   :  { %4097 = dma.done.wait [#allocation4], 6144  }
 0xaa3   :  { %4098 = vsyncadd [#allocation4], 4294961152 }
 0xaa4   :  { %4099 = dma.done.wait [#allocation10], 384  }
 0xaa5   :  { %4100 = vsyncadd [#allocation10], 4294966912 }
 0xaa6   :  { %2613 = vsyncpa [#allocation3], 1 }
 0xaa7   :  { %2614 = vsyncpa [#allocation6], 1 }
 0xaa8   :  { %2615 = vsyncpa [#allocation4], 1 }
 0xaa9   :  { %2616 = vsyncpa [#allocation10], 1 }

</bundles_post_ra>
